<compile_context>
chip_gen: v5e
topology: v5e:2x2
jax: 0.10.0
libtpu: 0.0.40
codegen_flags: <defaults>
</compile_context>

<pallas_src>
import numpy as np
import jax
import jax.numpy as jnp
from jax.experimental import pallas as pl
from jax.experimental.pallas import tpu as pltpu

_LANES = 128
_HID = 5
_TR_TARGET = 2048   # up to 2048*128 = 262144 batch rows per grid step (~6.5 MiB VMEM)


def _round_up(x, m):
    return ((x + m - 1) // m) * m


def _deinterleave_matrix():
    """Permutation S[256,256]: (x@S)[:, j] = x[:, 2j], (x@S)[:, 128+j] = x[:, 2j+1]."""
    s = np.zeros((2 * _LANES, 2 * _LANES), np.float32)
    j = np.arange(_LANES)
    s[2 * j, j] = 1.0            # feature 0 -> lanes [0, 128)
    s[2 * j + 1, _LANES + j] = 1.0   # feature 1 -> lanes [128, 256)
    return s


def mlp_kernel(params_ref, s_ref, x_ref, o_ref):
    """One batch tile of the teacher_model forward.

    params_ref: SMEM f32[21] = [W1^T row-major (10) | b1 (5) | 0.2*w2 (5) | 0.2*b2 (1)]
    s_ref:      VMEM f32[256, 256] lane de-interleave permutation (resident, const index map)
    x_ref:      VMEM f32[tr, 256]  interleaved (x0, x1) lane pairs, batch on lanes
    o_ref:      VMEM f32[tr, 128]  lane-dense output
    """
    p = [params_ref[i] for i in range(3 * _HID + _HID + 1)]   # bind 21 scalars once

    # De-interleave on the otherwise-idle MXU (permutation matrix, f32-exact at HIGHEST).
    xs = jnp.dot(x_ref[...], s_ref[...],
                 preferred_element_type=jnp.float32,
                 precision=jax.lax.Precision.HIGHEST)
    x0 = xs[:, :_LANES]          # [tr, 128]
    x1 = xs[:, _LANES:]          # [tr, 128]

    # Unrolled VPU broadcast-MAC over the 5 hidden units (j=0 seeds the accumulator).
    h = jnp.maximum(x0 * p[0] + x1 * p[5] + p[10], 0.0)
    acc = h * p[15]
    for j in range(1, _HID):
        h = jnp.maximum(x0 * p[j] + x1 * p[5 + j] + p[10 + j], 0.0)
        acc = acc + h * p[15 + j]
    o_ref[...] = acc + p[20]     # the model's /5 is pre-folded into p[15:21]


def teacher_model_forward(x, w1, b1, w2, b2):
    """x: [B, 2] f32; PyTorch-shaped params: w1 [5,2], b1 [5], w2 [1,5], b2 [1]."""
    B = x.shape[0]
    x = x.astype(jnp.float32)

    # Pack all parameters into one resident SMEM vector; fold the trailing /5 into w2, b2.
    params = jnp.concatenate([
        jnp.transpose(w1).reshape(-1),     # [W1[:,0] (5) | W1[:,1] (5)]
        b1.reshape(-1),                    # b1 (5)
        w2.reshape(-1) * 0.2,              # 0.2 * w2 (5)
        b2.reshape(-1) * 0.2,              # 0.2 * b2 (1)
    ]).astype(jnp.float32)

    s = jnp.asarray(_deinterleave_matrix())

    # Adaptive batch tiling: batch index b -> (row = b // 128, lane = b % 128).
    rows = pl.cdiv(B, _LANES)
    n_tiles = pl.cdiv(rows, _TR_TARGET)
    if n_tiles == 1 and rows >= 16:
        n_tiles = 2                        # keep >=2 grid steps so v7x megacore engages
    tr = _round_up(pl.cdiv(rows, n_tiles), 8)   # (8,128)-aligned, minimal padding
    n_tiles = pl.cdiv(rows, tr)
    rows_pad = n_tiles * tr
    b_pad = rows_pad * _LANES
    if b_pad != B:
        x = jnp.pad(x, ((0, b_pad - B), (0, 0)))
    xi = x.reshape(rows_pad, 2 * _LANES)   # zero-cost view of HBM layout (no transpose pass)

    out2d = pl.pallas_call(
        mlp_kernel,
        out_shape=jax.ShapeDtypeStruct((rows_pad, _LANES), jnp.float32),
        grid=(n_tiles,),
        in_specs=[
            pl.BlockSpec(memory_space=pltpu.MemorySpace.SMEM),            # packed params
            pl.BlockSpec((2 * _LANES, 2 * _LANES), lambda i: (0, 0)),     # de-interleave S (resident)
            pl.BlockSpec((tr, 2 * _LANES), lambda i: (i, 0)),             # interleaved x tile
        ],
        out_specs=pl.BlockSpec((tr, _LANES), lambda i: (i, 0)),
        compiler_params=pltpu.CompilerParams(
            dimension_semantics=("parallel",),    # independent batch tiles -> shard across TCs
        ),
    )(params, s, xi)

    return out2d.reshape(b_pad, 1)[:B]


def reference_forward(x, w1, b1, w2, b2):
    h = jnp.maximum(x @ w1.T + b1, 0.0)
    return (h @ w2.T + b2) / 5.0


if __name__ == "__main__":
    key = jax.random.PRNGKey(0)
    kx, k1, k2, k3, k4 = jax.random.split(key, 5)

    # PyTorch nn.Linear shapes: fc1.weight [5,2], fc1.bias [5]; fc2.weight [1,5], fc2.bias [1]
    lim1 = 1.0 / jnp.sqrt(2.0)
    lim2 = 1.0 / jnp.sqrt(5.0)
    w1 = jax.random.uniform(k1, (5, 2), jnp.float32, -lim1, lim1)
    b1 = jax.random.uniform(k2, (5,), jnp.float32, -lim1, lim1)
    w2 = jax.random.uniform(k3, (1, 5), jnp.float32, -lim2, lim2)
    b2 = jax.random.uniform(k4, (1,), jnp.float32, -lim2, lim2)

    # Small batch (padded to one 128-lane row) and a ragged multi-tile case
    # (exercises adaptive tiling, the >=2-step grid, and the padded tail).
    for B in (8, 4224):
        x = jax.random.normal(jax.random.fold_in(kx, B), (B, 2), dtype=jnp.float32)
        out = jax.block_until_ready(teacher_model_forward(x, w1, b1, w2, b2))
        ref = reference_forward(x, w1, b1, w2, b2)
        assert out.shape == (B, 1), out.shape
        err = float(jnp.max(jnp.abs(out - ref)))
        assert jnp.allclose(out, ref, atol=5e-5, rtol=5e-5), (B, err)

    print("KERNEL_OK")
</pallas_src>

<mosaic_0001>
module attributes {stable_mosaic.version = 11 : i64} {
  func.func @mlp_kernel(%arg0: i32, %arg1: memref<21xf32, #tpu.memory_space<smem>>, %arg2: memref<256x256xf32, #tpu.memory_space<vmem>>, %arg3: memref<8x256xf32, #tpu.memory_space<vmem>>, %arg4: memref<8x128xf32, #tpu.memory_space<vmem>>) attributes {dimension_semantics = [#tpu.dimension_semantics<parallel>], iteration_bounds = array<i64: 1>, scalar_prefetch = 0 : i64, scratch_operands = 0 : i64, tpu.core_type = #tpu.core_type<tc>, window_params = [{transform_indices = @transform_0, window_bounds = array<i64: 21>}, {pipeline_mode = #tpu.pipeline_mode<synchronous>, transform_indices = @transform_1, window_bounds = array<i64: 256, 256>}, {transform_indices = @transform_2, window_bounds = array<i64: 8, 256>}, {transform_indices = @transform_3, window_bounds = array<i64: 8, 128>}]} {
    %c0 = arith.constant 0 : index
    %0 = memref.load %arg1[%c0] : memref<21xf32, #tpu.memory_space<smem>>
    %c1 = arith.constant 1 : index
    %1 = memref.load %arg1[%c1] : memref<21xf32, #tpu.memory_space<smem>>
    %c2 = arith.constant 2 : index
    %2 = memref.load %arg1[%c2] : memref<21xf32, #tpu.memory_space<smem>>
    %c3 = arith.constant 3 : index
    %3 = memref.load %arg1[%c3] : memref<21xf32, #tpu.memory_space<smem>>
    %c4 = arith.constant 4 : index
    %4 = memref.load %arg1[%c4] : memref<21xf32, #tpu.memory_space<smem>>
    %c5 = arith.constant 5 : index
    %5 = memref.load %arg1[%c5] : memref<21xf32, #tpu.memory_space<smem>>
    %c6 = arith.constant 6 : index
    %6 = memref.load %arg1[%c6] : memref<21xf32, #tpu.memory_space<smem>>
    %c7 = arith.constant 7 : index
    %7 = memref.load %arg1[%c7] : memref<21xf32, #tpu.memory_space<smem>>
    %c8 = arith.constant 8 : index
    %8 = memref.load %arg1[%c8] : memref<21xf32, #tpu.memory_space<smem>>
    %c9 = arith.constant 9 : index
    %9 = memref.load %arg1[%c9] : memref<21xf32, #tpu.memory_space<smem>>
    %c10 = arith.constant 10 : index
    %10 = memref.load %arg1[%c10] : memref<21xf32, #tpu.memory_space<smem>>
    %c11 = arith.constant 11 : index
    %11 = memref.load %arg1[%c11] : memref<21xf32, #tpu.memory_space<smem>>
    %c12 = arith.constant 12 : index
    %12 = memref.load %arg1[%c12] : memref<21xf32, #tpu.memory_space<smem>>
    %c13 = arith.constant 13 : index
    %13 = memref.load %arg1[%c13] : memref<21xf32, #tpu.memory_space<smem>>
    %c14 = arith.constant 14 : index
    %14 = memref.load %arg1[%c14] : memref<21xf32, #tpu.memory_space<smem>>
    %c15 = arith.constant 15 : index
    %15 = memref.load %arg1[%c15] : memref<21xf32, #tpu.memory_space<smem>>
    %c16 = arith.constant 16 : index
    %16 = memref.load %arg1[%c16] : memref<21xf32, #tpu.memory_space<smem>>
    %c17 = arith.constant 17 : index
    %17 = memref.load %arg1[%c17] : memref<21xf32, #tpu.memory_space<smem>>
    %c18 = arith.constant 18 : index
    %18 = memref.load %arg1[%c18] : memref<21xf32, #tpu.memory_space<smem>>
    %c19 = arith.constant 19 : index
    %19 = memref.load %arg1[%c19] : memref<21xf32, #tpu.memory_space<smem>>
    %c20 = arith.constant 20 : index
    %20 = memref.load %arg1[%c20] : memref<21xf32, #tpu.memory_space<smem>>
    %c0_0 = arith.constant 0 : index
    %c0_1 = arith.constant 0 : index
    %21 = vector.load %arg3[%c0_0, %c0_1] : memref<8x256xf32, #tpu.memory_space<vmem>>, vector<8x256xf32>
    %c0_2 = arith.constant 0 : index
    %c0_3 = arith.constant 0 : index
    %22 = vector.load %arg2[%c0_2, %c0_3] : memref<256x256xf32, #tpu.memory_space<vmem>>, vector<256x256xf32>
    %cst = arith.constant dense<0.000000e+00> : vector<8x256xf32>
    %23 = tpu.matmul %21, %22, %cst {dimension_numbers = #tpu.dot_dimension_numbers<[1], [0], [0], [1], [0, 0, 1, 1], [], []>, precision = #tpu.contract_precision<fp32>} : vector<8x256xf32>, vector<256x256xf32>, vector<8x256xf32> -> vector<8x256xf32>
    %24 = vector.extract_strided_slice %23 {offsets = [0, 0], sizes = [8, 128], strides = [1, 1]} : vector<8x256xf32> to vector<8x128xf32>
    %25 = vector.extract_strided_slice %23 {offsets = [0, 128], sizes = [8, 128], strides = [1, 1]} : vector<8x256xf32> to vector<8x128xf32>
    %26 = vector.broadcast %0 : f32 to vector<8x128xf32>
    %27 = arith.mulf %24, %26 : vector<8x128xf32>
    %28 = vector.broadcast %5 : f32 to vector<8x128xf32>
    %29 = arith.mulf %25, %28 : vector<8x128xf32>
    %30 = arith.addf %27, %29 : vector<8x128xf32>
    %31 = vector.broadcast %10 : f32 to vector<8x128xf32>
    %32 = arith.addf %30, %31 : vector<8x128xf32>
    %cst_4 = arith.constant 0.000000e+00 : f32
    %33 = vector.broadcast %cst_4 : f32 to vector<8x128xf32>
    %34 = arith.maximumf %32, %33 : vector<8x128xf32>
    %35 = vector.broadcast %15 : f32 to vector<8x128xf32>
    %36 = arith.mulf %34, %35 : vector<8x128xf32>
    %37 = vector.broadcast %1 : f32 to vector<8x128xf32>
    %38 = arith.mulf %24, %37 : vector<8x128xf32>
    %39 = vector.broadcast %6 : f32 to vector<8x128xf32>
    %40 = arith.mulf %25, %39 : vector<8x128xf32>
    %41 = arith.addf %38, %40 : vector<8x128xf32>
    %42 = vector.broadcast %11 : f32 to vector<8x128xf32>
    %43 = arith.addf %41, %42 : vector<8x128xf32>
    %cst_5 = arith.constant 0.000000e+00 : f32
    %44 = vector.broadcast %cst_5 : f32 to vector<8x128xf32>
    %45 = arith.maximumf %43, %44 : vector<8x128xf32>
    %46 = vector.broadcast %16 : f32 to vector<8x128xf32>
    %47 = arith.mulf %45, %46 : vector<8x128xf32>
    %48 = arith.addf %36, %47 : vector<8x128xf32>
    %49 = vector.broadcast %2 : f32 to vector<8x128xf32>
    %50 = arith.mulf %24, %49 : vector<8x128xf32>
    %51 = vector.broadcast %7 : f32 to vector<8x128xf32>
    %52 = arith.mulf %25, %51 : vector<8x128xf32>
    %53 = arith.addf %50, %52 : vector<8x128xf32>
    %54 = vector.broadcast %12 : f32 to vector<8x128xf32>
    %55 = arith.addf %53, %54 : vector<8x128xf32>
    %cst_6 = arith.constant 0.000000e+00 : f32
    %56 = vector.broadcast %cst_6 : f32 to vector<8x128xf32>
    %57 = arith.maximumf %55, %56 : vector<8x128xf32>
    %58 = vector.broadcast %17 : f32 to vector<8x128xf32>
    %59 = arith.mulf %57, %58 : vector<8x128xf32>
    %60 = arith.addf %48, %59 : vector<8x128xf32>
    %61 = vector.broadcast %3 : f32 to vector<8x128xf32>
    %62 = arith.mulf %24, %61 : vector<8x128xf32>
    %63 = vector.broadcast %8 : f32 to vector<8x128xf32>
    %64 = arith.mulf %25, %63 : vector<8x128xf32>
    %65 = arith.addf %62, %64 : vector<8x128xf32>
    %66 = vector.broadcast %13 : f32 to vector<8x128xf32>
    %67 = arith.addf %65, %66 : vector<8x128xf32>
    %cst_7 = arith.constant 0.000000e+00 : f32
    %68 = vector.broadcast %cst_7 : f32 to vector<8x128xf32>
    %69 = arith.maximumf %67, %68 : vector<8x128xf32>
    %70 = vector.broadcast %18 : f32 to vector<8x128xf32>
    %71 = arith.mulf %69, %70 : vector<8x128xf32>
    %72 = arith.addf %60, %71 : vector<8x128xf32>
    %73 = vector.broadcast %4 : f32 to vector<8x128xf32>
    %74 = arith.mulf %24, %73 : vector<8x128xf32>
    %75 = vector.broadcast %9 : f32 to vector<8x128xf32>
    %76 = arith.mulf %25, %75 : vector<8x128xf32>
    %77 = arith.addf %74, %76 : vector<8x128xf32>
    %78 = vector.broadcast %14 : f32 to vector<8x128xf32>
    %79 = arith.addf %77, %78 : vector<8x128xf32>
    %cst_8 = arith.constant 0.000000e+00 : f32
    %80 = vector.broadcast %cst_8 : f32 to vector<8x128xf32>
    %81 = arith.maximumf %79, %80 : vector<8x128xf32>
    %82 = vector.broadcast %19 : f32 to vector<8x128xf32>
    %83 = arith.mulf %81, %82 : vector<8x128xf32>
    %84 = arith.addf %72, %83 : vector<8x128xf32>
    %85 = vector.broadcast %20 : f32 to vector<8x128xf32>
    %86 = arith.addf %84, %85 : vector<8x128xf32>
    %c0_9 = arith.constant 0 : index
    %c0_10 = arith.constant 0 : index
    %87 = vector.load %arg4[%c0_9, %c0_10] : memref<8x128xf32, #tpu.memory_space<vmem>>, vector<8x128xf32>
    tpu.vector_store %arg4[%c0_9, %c0_10], %86 {strides = array<i32>} : memref<8x128xf32, #tpu.memory_space<vmem>>, vector<8x128xf32>,
    return
  }
  func.func @transform_0(%arg0: i32) -> i32 {
    %c0_i32 = arith.constant 0 : i32
    %c0_i32_0 = arith.constant 0 : i32
    return %c0_i32 : i32
  }
  func.func @transform_1(%arg0: i32) -> (i32, i32) {
    %c0_i32 = arith.constant 0 : i32
    %c0_i32_0 = arith.constant 0 : i32
    %c0_i32_1 = arith.constant 0 : i32
    return %c0_i32, %c0_i32_0 : i32, i32
  }
  func.func @transform_2(%arg0: i32) -> (i32, i32) {
    %c0_i32 = arith.constant 0 : i32
    %c0_i32_0 = arith.constant 0 : i32
    return %arg0, %c0_i32 : i32, i32
  }
  func.func @transform_3(%arg0: i32) -> (i32, i32) {
    %c0_i32 = arith.constant 0 : i32
    %c0_i32_0 = arith.constant 0 : i32
    return %arg0, %c0_i32 : i32, i32
  }
}

</mosaic_0001>

<bundles_post_ra>
// kernel: tpu_custom_call.1
= control target key start
LH: loop header
LB: loop body
LE: loop exit
PB: predicated region body
PF: predicated region fallthrough
CT: control target
= control target key end

     0   :  { %8 = vsyncpa [#allocation5], 0  ;;  %s2806_s0 = inlined_call_operand.hbm [shape: f32[21], index: 0, kind: input, shape index: {}]   ;;  %s2807_s1 = inlined_call_operand.hbm [shape: f32[256,256], index: 1, kind: input, shape index: {}]   ;;  %s2808_s2 = inlined_call_operand.hbm [shape: f32[8,256], index: 2, kind: input, shape index: {}]   ;;  %s2809_s3 = inlined_call_operand.hbm [shape: f32[8,128], index: 3, kind: output, shape index: {}]  }
   0x1   :  { %9 = vsyncpa [#allocation3], 0 }
   0x2   :  { %10 = vsyncpa [#allocation8], 0 }
   0x3   :  { %11 = vsyncpa [#allocation4], 0  ;;  %s17_s14 = sshll.u32 %s2806_s0, 4  ;;  %s25_s17 = sshll.u32 %s2807_s1, 4  ;;  %s18_s14 = int_to_ptr.hbm [resolvable:$true] %s17_s14  ;;  %s26_s17 = int_to_ptr.hbm [resolvable:$true] %s25_s17 }
   0x4   :  { %s1703_s18 = smov [#allocation2]   ;;  %s1704_s19 = smov [#allocation6]  }
   0x5   :  { %20 = dma.hbm_to_smem %s18_s14, 16, %s1703_s18, [#allocation5]  }
   0x6   :  { %s27_s20 = sshll.u32 %s1704_s19, 4  ;;  %s1705_s21 = smov 256   ;;  %s28_s20 = int_to_ptr.vmem [resolvable:$true] %s27_s20 }
   0x7   :  { %s1706_s22 = smov 16   ;;  %s39_s25 = sshll.u32 %s2808_s2, 4  ;;  %s40_s25 = int_to_ptr.hbm [resolvable:$true] %s39_s25 }
   0x8   :  { %33 = dma.hbm_to_vmem [thread:$0]  %s26_s17, 8192, %s28_s20, [#allocation3], %s1705_s21, %s1705_s21, %s1706_s22  }
   0x9   :  { %s1707_s0 = smov [#allocation7]  }
   0xa   :  { %s41_s26 = sshll.u32 %s1707_s0, 4  ;;  %s42_s26 = int_to_ptr.vmem [resolvable:$true] %s41_s26 }
   0xb   :  { %44 = dma.hbm_to_vmem [thread:$0]  %s40_s25, 256, %s42_s26, [#allocation8]  }
   0xc   :  { %1695 = dma.done.wait [#allocation5], 16  }
   0xd   :  { %1696 = vsyncadd [#allocation5], 4294967280 }
   0xe   :  { %1697 = dma.done.wait [#allocation3], 8192  }
   0xf   :  { %1698 = vsyncadd [#allocation3], 4294959104 }
  0x10   :  { %1699 = dma.done.wait [#allocation8], 256  }
  0x11   :  { %1700 = vsyncadd [#allocation8], 4294967040 }
  0x12   :  { %57 = sfence }
  0x13   :  { %v111_v0 = vld [vmem:[#allocation6 + $0xf0] sm:$0xff]  ;;  %v109_v1 = vld [vmem:[#allocation6 + $0xe0] sm:$0xff]  ;;  %s2746_s1 = sld [smem:[#allocation2]]  ;;  %s1708_s19 = smov [#allocation9]  }
  0x14   :  { %v107_v2 = vld [vmem:[#allocation6 + $0xd0] sm:$0xff]  ;;  %v1738_v3 = vand.u32 4294901760, %v111_v0  ;;  %v1740_v4 = vand.u32 4294901760, %v109_v1  ;;  %v105_v6 = vld [vmem:[#allocation6 + $0xc0] sm:$0xff]  ;;  %s2748_s2 = sld [smem:[#allocation2 + $0x1]]  ;;  %s1571_s20 = sshll.u32 %s1708_s19, 4  ;;  %s1572_s20 = int_to_ptr.vmem [resolvable:$true] %s1571_s20 }
  0x15   :  { %v1742_v5 = vand.u32 4294901760, %v107_v2  ;;  %v103_v7 = vld [vmem:[#allocation6 + $0xb0] sm:$0xff]  ;;  %v101_v8 = vld [vmem:[#allocation6 + $0xa0] sm:$0xff]  ;;  %v1744_v9 = vand.u32 4294901760, %v105_v6  ;;  %s2750_s27 = sld [smem:[#allocation2 + $0x2]]  ;;  %s1573_s23 = sshll.u32 %s2809_s3, 4  ;;  %s1574_s23 = int_to_ptr.hbm [resolvable:$true] %s1573_s23 }
  0x16   :  { %v1746_v10 = vand.u32 4294901760, %v103_v7  ;;  %v1748_v11 = vand.u32 4294901760, %v101_v8  ;;  %v99_v12 = vld [vmem:[#allocation6 + $0x90] sm:$0xff]  ;;  %v97_v13 = vld [vmem:[#allocation6 + $0x80] sm:$0xff]  ;;  %146 = vmatpush.msra.mxu0 %v1738_v3  ;;  %v1752_v14 = vsub.f32 %v111_v0, %v1738_v3  ;;  %v1755_v15 = vsub.f32 %v109_v1, %v1740_v4  ;;  %342 = vmatpush.msra.mxu3 %v1738_v3  ;;  %s2752_s28 = sld [smem:[#allocation2 + $0x3]] }
  0x17   :  { %v1759_v16 = vsub.f32 %v107_v2, %v1742_v5  ;;  %v1761_v17 = vand.u32 4294901760, %v99_v12  ;;  %v95_v18 = vld [vmem:[#allocation6 + $0x70] sm:$0xff]  ;;  %v1764_v19 = vsub.f32 %v105_v6, %v1744_v9  ;;  %v1777_v25 = vand.u32 4294901760, %v97_v13  ;;  %v93_v26 = vld [vmem:[#allocation6 + $0x60] sm:$0xff]  ;;  %s2754_s29 = sld [smem:[#allocation2 + $0x4]] }
  0x18   :  { %v1767_v20 = vsub.f32 %v103_v7, %v1746_v10  ;;  %v1770_v21 = vsub.f32 %v101_v8, %v1748_v11  ;;  %148 = vmatpush.msra.mxu0 %v1740_v4  ;;  %289 = vmatpush.msra.mxu2 %v1752_v14  ;;  %v188_v22 = vand.u32 4294901760, %v1752_v14  ;;  %v2825_v23 = vand.u32 4294901760, %v1755_v15  ;;  %v91_v34 = vld [vmem:[#allocation6 + $0x50] sm:$0xff]  ;;  %v89_v42 = vld [vmem:[#allocation6 + $0x40] sm:$0xff]  ;;  %s2756_s30 = sld [smem:[#allocation2 + $0x5]] }
  0x19   :  { %v2823_v24 = vand.u32 4294901760, %v1759_v16  ;;  %344 = vmatpush.msra.mxu3 %v1740_v4  ;;  %v2821_v27 = vand.u32 4294901760, %v1764_v19  ;;  %v1781_v28 = vand.u32 4294901760, %v95_v18  ;;  %v1784_v29 = vsub.f32 %v99_v12, %v1761_v17  ;;  %v87_v48 = vld [vmem:[#allocation6 + $0x30] sm:$0xff]  ;;  %v85_v54 = vld [vmem:[#allocation6 + $0x20] sm:$0xff]  ;;  %s2758_s4 = sld [smem:[#allocation2 + $0x6]] }
  0x1a   :  { %150 = vmatpush.msra.mxu0 %v1742_v5  ;;  %292 = vmatpush.msra.mxu2 %v1755_v15  ;;  %v189_v30 = vsub.f32 %v1752_v14, %v188_v22  ;;  %v195_v31 = vsub.f32 %v1755_v15, %v2825_v23  ;;  %v2819_v33 = vand.u32 4294901760, %v1767_v20  ;;  %v1799_v35 = vand.u32 4294901760, %v93_v26  ;;  %v143_v59 = vld [vmem:[#allocation6 + $0x1f0] sm:$0xff]  ;;  %v81_v2 = vld [vmem:[#allocation6] sm:$0xff]  ;;  %s2760_s5 = sld [smem:[#allocation2 + $0x7]] }
  0x1b   :  { %v201_v32 = vsub.f32 %v1759_v16, %v2823_v24  ;;  %346 = vmatpush.msra.mxu3 %v1742_v5  ;;  %v2817_v36 = vand.u32 4294901760, %v1770_v21  ;;  %v207_v39 = vsub.f32 %v1764_v19, %v2821_v27  ;;  %v1808_v40 = vsub.f32 %v97_v13, %v1777_v25  ;;  %v83_v61 = vld [vmem:[#allocation6 + $0x10] sm:$0xff]  ;;  %v141_v6 = vld [vmem:[#allocation6 + $0x1e0] sm:$0xff]  ;;  %s2762_s6 = sld [smem:[#allocation2 + $0x8]] }
  0x1c   :  { %152 = vmatpush.msra.mxu0 %v1744_v9  ;;  %v190_v37 = vand.u32 4294901760, %v189_v30  ;;  %295 = vmatpush.msra.mxu2 %v1759_v16  ;;  %v196_v38 = vand.u32 4294901760, %v195_v31  ;;  %v1811_v41 = vand.u32 4294901760, %v91_v34  ;;  %v213_v44 = vsub.f32 %v1767_v20, %v2819_v33  ;;  %s2764_s7 = sld [smem:[#allocation2 + $0x9]] }
  0x1d   :  { %348 = vmatpush.msra.mxu3 %v1744_v9  ;;  %v202_v43 = vand.u32 4294901760, %v201_v32  ;;  %v2816_v45 = vand.u32 4294901760, %v1784_v29  ;;  %v1819_v46 = vsub.f32 %v95_v18, %v1781_v28  ;;  %v219_v47 = vsub.f32 %v1770_v21, %v2817_v36  ;;  %v139_v32 = vld [vmem:[#allocation6 + $0x1d0] sm:$0xff]  ;;  %s2766_s8 = sld [smem:[#allocation2 + $0xa]] }
  0x1e   :  { %154 = vmatpush.msra.mxu0 %v1746_v10  ;;  %191 = vmatpush.msra.mxu1 %v190_v37  ;;  %v208_v49 = vand.u32 4294901760, %v207_v39  ;;  %v1827_v50 = vand.u32 4294901760, %v89_v42  ;;  %v2815_v51 = vand.u32 4294901760, %v1808_v40  ;;  %v1831_v52 = vsub.f32 %v93_v26, %v1799_v35  ;;  %s2768_s9 = sld [smem:[#allocation2 + $0xb]] }
  0x1f   :  { %298 = vmatpush.msra.mxu2 %v1764_v19  ;;  %350 = vmatpush.msra.mxu3 %v1746_v10  ;;  %v1836_v53 = vsub.f32 %v91_v34, %v1811_v41  ;;  %v214_v55 = vand.u32 4294901760, %v213_v44  ;;  %v225_v56 = vsub.f32 %v1784_v29, %v2816_v45  ;;  %v1842_v57 = vand.u32 4294901760, %v87_v48  ;;  %v137_v44 = vld [vmem:[#allocation6 + $0x1c0] sm:$0xff]  ;;  %s2770_s10 = sld [smem:[#allocation2 + $0xc]] }
  0x20   :  { %156 = vmatpush.msra.mxu0 %v1748_v11  ;;  %197 = vmatpush.msra.mxu1 %v196_v38  ;;  %v2814_v58 = vand.u32 4294901760, %v1819_v46  ;;  %v220_v60 = vand.u32 4294901760, %v219_v47  ;;  %v231_v62 = vsub.f32 %v1808_v40, %v2815_v51  ;;  %v1851_v63 = vand.u32 4294901760, %v85_v54  ;;  %v129_v45 = vld [vmem:[#allocation6 + $0x180] sm:$0xff]  ;;  %s2772_s11 = sld [smem:[#allocation2 + $0xd]] }
  0x21   :  { %301 = vmatpush.msra.mxu2 %v1767_v20  ;;  %352 = vmatpush.msra.mxu3 %v1748_v11  ;;  %v2812_v0 = vand.u32 4294901760, %v1831_v52  ;;  %v1855_v1 = vsub.f32 %v89_v42, %v1827_v50  ;;  %v2811_v7 = vand.u32 4294901760, %v1836_v53  ;;  %v1860_v8 = vand.u32 4294901760, %v143_v59  ;;  %s2776_s12 = sld [smem:[#allocation2 + $0xe]] }
  0x22   :  { %158 = vmatpush.msra.mxu0 %v1761_v17  ;;  %203 = vmatpush.msra.mxu1 %v202_v43  ;;  %v226_v12 = vand.u32 4294901760, %v225_v56  ;;  %v237_v13 = vsub.f32 %v1819_v46, %v2814_v58  ;;  %v1866_v18 = vand.u32 4294901760, %v83_v61  ;;  %v1869_v26 = vsub.f32 %v87_v48, %v1842_v57  ;;  %s2780_s13 = sld [smem:[#allocation2 + $0xf]] }
  0x23   :  { %304 = vmatpush.msra.mxu2 %v1770_v21  ;;  %354 = vmatpush.msra.mxu3 %v1761_v17  ;;  %v1873_v30 = vand.u32 4294901760, %v81_v2  ;;  %v1875_v31 = vand.u32 4294901760, %v141_v6  ;;  %v232_v34 = vand.u32 4294901760, %v231_v62  ;;  %v243_v37 = vsub.f32 %v1831_v52, %v2812_v0  ;;  %s2787_s14 = sld [smem:[#allocation2 + $0x10]] }
  0x24   :  { %160 = vmatpush.msra.mxu0 %v1777_v25  ;;  %209 = vmatpush.msra.mxu1 %v208_v49  ;;  %v2810_v38 = vand.u32 4294901760, %v1855_v1  ;;  %v1883_v39 = vsub.f32 %v85_v54, %v1851_v63  ;;  %v249_v42 = vsub.f32 %v1836_v53, %v2811_v7  ;;  %v1891_v43 = vsub.f32 %v143_v59, %v1860_v8  ;;  %v135_v59 = vld [vmem:[#allocation6 + $0x1b0] sm:$0xff]  ;;  %s2790_s15 = sld [smem:[#allocation2 + $0x11]] }
  0x25   :  { %307 = vmatpush.msra.mxu2 %v1784_v29  ;;  %356 = vmatpush.msra.mxu3 %v1777_v25  ;;  %2858 = vst [vmem:[#allocation14_spill] sm:$0xff] %v1873_v30  ;;  %v238_v47 = vand.u32 4294901760, %v237_v13  ;;  %v2813_v48 = vand.u32 4294901760, %v1869_v26  ;;  %v1896_v49 = vsub.f32 %v83_v61, %v1866_v18  ;;  %v1898_v54 = vand.u32 4294901760, %v139_v32  ;;  %v133_v13 = vld [vmem:[#allocation6 + $0x1a0] sm:$0xff]  ;;  %s2793_s16 = sld [smem:[#allocation2 + $0x12]] }
  0x26   :  { %162 = vmatpush.msra.mxu0 %v1781_v28  ;;  %215 = vmatpush.msra.mxu1 %v214_v55  ;;  %v1903_v55 = vsub.f32 %v81_v2, %v1873_v30  ;;  %v1906_v56 = vsub.f32 %v141_v6, %v1875_v31  ;;  %v255_v61 = vsub.f32 %v1855_v1, %v2810_v38  ;;  %v2818_v62 = vand.u32 4294901760, %v1883_v39  ;;  %s1603_s17 = sld [smem:[#allocation2 + $0x13]] }
  0x27   :  { %310 = vmatpush.msra.mxu2 %v1808_v40  ;;  %358 = vmatpush.msra.mxu3 %v1781_v28  ;;  %v250_v2 = vand.u32 4294901760, %v249_v42  ;;  %v2820_v6 = vand.u32 4294901760, %v1891_v43  ;;  %v1924_v38 = vsub.f32 %v139_v32, %v1898_v54  ;;  %v1926_v7 = vand.u32 4294901760, %v135_v59  ;;  %v131_v42 = vld [vmem:[#allocation6 + $0x190] sm:$0xff]  ;;  %s1604_s18 = sld [smem:[#allocation2 + $0x14]] }
  0x28   :  { %164 = vmatpush.msra.mxu0 %v1799_v35  ;;  %221 = vmatpush.msra.mxu1 %v220_v60  ;;  %v244_v60 = vand.u32 4294901760, %v243_v37  ;;  %v2822_v37 = vand.u32 4294901760, %v1896_v49  ;;  %v2826_v0 = vand.u32 4294901760, %v1903_v55  ;;  %v267_v32 = vsub.f32 %v1883_v39, %v2818_v62 }
  0x29   :  { %313 = vmatpush.msra.mxu2 %v1819_v46  ;;  %360 = vmatpush.msra.mxu3 %v1799_v35  ;;  %v1939_v51 = vand.u32 4294901760, %v133_v13  ;;  %v530_v36 = vsub.f32 %v1891_v43, %v2820_v6  ;;  %v2827_v62 = vand.u32 4294901760, %v1924_v38  ;;  %v1954_v33 = vsub.f32 %v135_v59, %v1926_v7 }
  0x2a   :  { %166 = vmatpush.msra.mxu0 %v1811_v41  ;;  %227 = vmatpush.msra.mxu1 %v226_v12  ;;  %v1913_v12 = vand.u32 4294901760, %v137_v44  ;;  %v1961_v27 = vand.u32 4294901760, %v129_v45  ;;  %v279_v59 = vsub.f32 %v1903_v55, %v2826_v0  ;;  %v2859_v14 = vand.u32 4294901760, %v1755_v15 }
  0x2b   :  { %316 = vmatpush.msra.mxu2 %v1831_v52  ;;  %362 = vmatpush.msra.mxu3 %v1811_v41  ;;  %v1969_v24 = vsub.f32 %v133_v13, %v1939_v51  ;;  %v542_v0 = vsub.f32 %v1924_v38, %v2827_v62  ;;  %v2861_v15 = vand.u32 4294901760, %v1759_v16  ;;  %v2863_v16 = vand.u32 4294901760, %v1764_v19 }
  0x2c   :  { %168 = vmatpush.msra.mxu0 %v1827_v50  ;;  %233 = vmatpush.msra.mxu1 %v232_v34  ;;  %v261_v34 = vsub.f32 %v1869_v26, %v2813_v48  ;;  %v256_v48 = vand.u32 4294901760, %v255_v61  ;;  %v1937_v58 = vsub.f32 %v137_v44, %v1913_v12  ;;  %v273_v44 = vsub.f32 %v1896_v49, %v2822_v37 }
  0x2d   :  { %319 = vmatpush.msra.mxu2 %v1836_v53  ;;  %364 = vmatpush.msra.mxu3 %v1827_v50  ;;  %v2865_v19 = vand.u32 4294901760, %v1767_v20  ;;  %v2867_v20 = vand.u32 4294901760, %v1770_v21  ;;  %v2870_v21 = vand.u32 4294901760, %v1784_v29  ;;  %v2872_v29 = vand.u32 4294901760, %v1808_v40 }
  0x2e   :  { %170 = vmatpush.msra.mxu0 %v1842_v57  ;;  %239 = vmatpush.msra.mxu1 %v238_v47  ;;  %v2824_v47 = vand.u32 4294901760, %v1906_v56  ;;  %v262_v61 = vand.u32 4294901760, %v261_v34  ;;  %v268_v34 = vand.u32 4294901760, %v267_v32  ;;  %v274_v32 = vand.u32 4294901760, %v273_v44 }
  0x2f   :  { %322 = vmatpush.msra.mxu2 %v1855_v1  ;;  %366 = vmatpush.msra.mxu3 %v1842_v57  ;;  %v2860_v44 = vand.u32 4294901760, %v1937_v58  ;;  %v2874_v40 = vand.u32 4294901760, %v1819_v46 }
  0x30   :  { %172 = vmatpush.msra.mxu0 %v1851_v63  ;;  %245 = vmatpush.msra.mxu1 %v244_v60  ;;  %v1946_v60 = vand.u32 4294901760, %v131_v42  ;;  %v536_v6 = vsub.f32 %v1906_v56, %v2824_v47  ;;  %v531_v47 = vand.u32 4294901760, %v530_v36  ;;  %v1988_v36 = vsub.f32 %v129_v45, %v1961_v27 }
  0x31   :  { %325 = vmatpush.msra.mxu2 %v1869_v26  ;;  %368 = vmatpush.msra.mxu3 %v1851_v63  ;;  %v548_v62 = vsub.f32 %v1937_v58, %v2860_v44 }
  0x32   :  { %174 = vmatpush.msra.mxu0 %v1866_v18  ;;  %251 = vmatpush.msra.mxu1 %v250_v2  ;;  %v127_v2 = vld [vmem:[#allocation6 + $0x170] sm:$0xff]  ;;  %v1975_v23 = vsub.f32 %v131_v42, %v1946_v60 }
  0x33   :  { %328 = vmatpush.msra.mxu2 %v1883_v39  ;;  %370 = vmatpush.msra.mxu3 %v1866_v18  ;;  %v1982_v37 = vand.u32 4294901760, %v127_v2  ;;  %v123_v42 = vld [vmem:[#allocation6 + $0x150] sm:$0xff] }
  0x34   :  { %176 = vmatpush.msra.mxu0 %v1873_v30  ;;  %257 = vmatpush.msra.mxu1 %v256_v48  ;;  %v125_v48 = vld [vmem:[#allocation6 + $0x160] sm:$0xff]  ;;  %v2007_v13 = vand.u32 4294901760, %v123_v42 }
  0x35   :  { %331 = vmatpush.msra.mxu2 %v1896_v49  ;;  %372 = vmatpush.msra.mxu3 %v1873_v30  ;;  %v1995_v30 = vand.u32 4294901760, %v125_v48  ;;  %v2005_v44 = vsub.f32 %v127_v2, %v1982_v37 }
  0x36   :  { %383 = vmatpush.msrb.mxu0 %v188_v22  ;;  %263 = vmatpush.msra.mxu1 %v262_v61  ;;  %v537_v22 = vand.u32 4294901760, %v536_v6  ;;  %v280_v61 = vand.u32 4294901760, %v279_v59  ;;  %v121_v6 = vld [vmem:[#allocation6 + $0x140] sm:$0xff]  ;;  %v2862_v59 = vand.u32 4294901760, %v1954_v33 }
  0x37   :  { %334 = vmatpush.msra.mxu2 %v1903_v55  ;;  %532 = vmatpush.msrb.mxu3 %v531_v47  ;;  %v2017_v2 = vsub.f32 %v125_v48, %v1995_v30  ;;  %v2019_v45 = vand.u32 4294901760, %v121_v6  ;;  %v2030_v48 = vsub.f32 %v123_v42, %v2007_v13 }
  0x38   :  { %387 = vmatpush.msrb.mxu0 %v2859_v14  ;;  %269 = vmatpush.msra.mxu1 %v268_v34  ;;  %v543_v34 = vand.u32 4294901760, %v542_v0  ;;  %v554_v14 = vsub.f32 %v1954_v33, %v2862_v59  ;;  %v549_v0 = vand.u32 4294901760, %v548_v62 }
  0x39   :  { %487 = vmatpush.msrb.mxu2 %v1860_v8  ;;  %538 = vmatpush.msrb.mxu3 %v537_v22  ;;  %v2866_v22 = vand.u32 4294901760, %v1975_v23  ;;  %v2043_v42 = vsub.f32 %v121_v6, %v2019_v45 }
  0x3a   :  { %391 = vmatpush.msrb.mxu0 %v2861_v15  ;;  %275 = vmatpush.msra.mxu1 %v274_v32  ;;  %v119_v15 = vld [vmem:[#allocation6 + $0x130] sm:$0xff]  ;;  %v2864_v32 = vand.u32 4294901760, %v1969_v24  ;;  %v555_v62 = vand.u32 4294901760, %v554_v14 }
  0x3b   :  { %489 = vmatpush.msrb.mxu2 %v1875_v31  ;;  %544 = vmatpush.msrb.mxu3 %v543_v34  ;;  %v2032_v47 = vand.u32 4294901760, %v119_v15 }
  0x3c   :  { %395 = vmatpush.msrb.mxu0 %v2863_v16  ;;  %281 = vmatpush.msra.mxu1 %v280_v61  ;;  %v560_v59 = vsub.f32 %v1969_v24, %v2864_v32  ;;  %v566_v61 = vsub.f32 %v1975_v23, %v2866_v22  ;;  %v79_v16 = vld [vmem:[#allocation7] sm:$0xff] }
  0x3d   :  { %491 = vmatpush.msrb.mxu2 %v1898_v54  ;;  %v117_v22 = vld [vmem:[#allocation6 + $0x120] sm:$0xff]  ;;  %550 = vmatpush.msrb.mxu3 %v549_v0  ;;  %v2045_v32 = vand.u32 4294901760, %v79_v16  ;;  %v2871_v0 = vand.u32 4294901760, %v2005_v44  ;;  %v2058_v14 = vsub.f32 %v119_v15, %v2032_v47 }
  0x3e   :  { %399 = vmatpush.msrb.mxu0 %v2865_v19  ;;  %450 = vmatpush.msrb.mxu1 %v1738_v3  ;;  %v2868_v3 = vand.u32 4294901760, %v1988_v36  ;;  %v561_v34 = vand.u32 4294901760, %v560_v59  ;;  %v2055_v6 = vand.u32 4294901760, %v117_v22 }
  0x3f   :  { %493 = vmatpush.msrb.mxu2 %v1913_v12  ;;  %2869 = vst [vmem:[#allocation15_spill] sm:$0xff] %v2045_v32  ;;  %556 = vmatpush.msrb.mxu3 %v555_v62  ;;  %v578_v59 = vsub.f32 %v2005_v44, %v2871_v0  ;;  %v2069_v0 = vsub.f32 %v79_v16, %v2045_v32 }
  0x40   :  { %403 = vmatpush.msrb.mxu0 %v2867_v20  ;;  %452 = vmatpush.msrb.mxu1 %v1740_v4  ;;  %v572_v19 = vsub.f32 %v1988_v36, %v2868_v3  ;;  %v567_v4 = vand.u32 4294901760, %v566_v61  ;;  %v115_v20 = vld [vmem:[#allocation6 + $0x110] sm:$0xff]  ;;  %v2873_v61 = vand.u32 4294901760, %v2017_v2  ;;  %v113_v3 = vld [vmem:[#allocation6 + $0x100] sm:$0xff]  ;;  %v2082_v16 = vsub.f32 %v117_v22, %v2055_v6 }
  0x41   :  { %495 = vmatpush.msrb.mxu2 %v1926_v7  ;;  %562 = vmatpush.msrb.mxu3 %v561_v34  ;;  %v2071_v15 = vand.u32 4294901760, %v115_v20  ;;  %v2087_v46 = vand.u32 4294901760, %v113_v3 }
  0x42   :  { %407 = vmatpush.msrb.mxu0 %v2870_v21  ;;  %454 = vmatpush.msrb.mxu1 %v1742_v5  ;;  %v573_v5 = vand.u32 4294901760, %v572_v19  ;;  %v584_v62 = vsub.f32 %v2017_v2, %v2873_v61  ;;  %v595_v21 = vand.u32 4294901760, %v2043_v42  ;;  %v2875_v19 = vand.u32 4294901760, %v2030_v48 }
  0x43   :  { %497 = vmatpush.msrb.mxu2 %v1939_v51  ;;  %568 = vmatpush.msrb.mxu3 %v567_v4  ;;  %v2876_v61 = vand.u32 4294901760, %v1831_v52  ;;  %v2097_v22 = vsub.f32 %v115_v20, %v2071_v15  ;;  %v2878_v52 = vand.u32 4294901760, %v1836_v53  ;;  %v2111_v53 = vsub.f32 %v113_v3, %v2087_v46 }
  0x44   :  { %411 = vmatpush.msrb.mxu0 %v2872_v29  ;;  %456 = vmatpush.msrb.mxu1 %v1744_v9  ;;  %v579_v9 = vand.u32 4294901760, %v578_v59  ;;  %v590_v34 = vsub.f32 %v2030_v48, %v2875_v19  ;;  %v601_v29 = vand.u32 4294901760, %v2058_v14  ;;  %v596_v4 = vsub.f32 %v2043_v42, %v595_v21 }
  0x45   :  { %499 = vmatpush.msrb.mxu2 %v1946_v60  ;;  %574 = vmatpush.msrb.mxu3 %v573_v5  ;;  %v2094_v59 = vand.u32 4294901760, %v2069_v0  ;;  %v2879_v19 = vand.u32 4294901760, %v1855_v1  ;;  %v2882_v3 = vand.u32 4294901760, %v1883_v39  ;;  %v2885_v39 = vand.u32 4294901760, %v1903_v55 }
  0x46   :  { %415 = vmatpush.msrb.mxu0 %v2874_v40  ;;  %458 = vmatpush.msrb.mxu1 %v1746_v10  ;;  %v585_v10 = vand.u32 4294901760, %v584_v62  ;;  %v591_v5 = vand.u32 4294901760, %v590_v34  ;;  %v602_v62 = vsub.f32 %v2058_v14, %v601_v29  ;;  %v607_v40 = vand.u32 4294901760, %v2082_v16 }
  0x47   :  { %501 = vmatpush.msrb.mxu2 %v1961_v27  ;;  %2877 = vst [vmem:[#allocation16_spill] sm:$0xff] %v2094_v59  ;;  %580 = vmatpush.msrb.mxu3 %v579_v9  ;;  %v180_v20 = vsub.f32 %v2069_v0, %v2094_v59  ;;  %v613_v9 = vand.u32 4294901760, %v2097_v22 }
  0x48   :  { %419 = vmatpush.msrb.mxu0 %v2876_v61  ;;  %460 = vmatpush.msrb.mxu1 %v1748_v11  ;;  %v80_v11 = vld [vmem:[#allocation7 + $0x8] sm:$0xff]  ;;  %v2881_v61 = vand.u32 4294901760, %v1869_v26  ;;  %v608_v1 = vsub.f32 %v2082_v16, %v607_v40 }
  0x49   :  { %503 = vmatpush.msrb.mxu2 %v1982_v37  ;;  %586 = vmatpush.msrb.mxu3 %v585_v10  ;;  %v2117_v34 = vand.u32 4294901760, %v80_v11  ;;  %v619_v10 = vand.u32 4294901760, %v2111_v53  ;;  %v2131_v26 = vand.u32 4294901760, %v180_v20 }
  0x4a   :  { %423 = vmatpush.msrb.mxu0 %v2878_v52  ;;  %462 = vmatpush.msrb.mxu1 %v1761_v17  ;;  %v597_v17 = vand.u32 4294901760, %v596_v4  ;;  %v2884_v52 = vand.u32 4294901760, %v1896_v49 }
  0x4b   :  { %505 = vmatpush.msrb.mxu2 %v1995_v30  ;;  %2880 = vst [vmem:[#allocation17_spill] sm:$0xff] %v2117_v34  ;;  %592 = vmatpush.msrb.mxu3 %v591_v5  ;;  %v2137_v4 = vsub.f32 %v80_v11, %v2117_v34  ;;  %v620_v5 = vsub.f32 %v2111_v53, %v619_v10 }
  0x4c   :  { %427 = vmatpush.msrb.mxu0 %v2879_v19  ;;  %464 = vmatpush.msrb.mxu1 %v1777_v25  ;;  %v603_v25 = vand.u32 4294901760, %v602_v62  ;;  %v2890_v62 = vld [vmem:[#allocation14_spill] sm:$0xff] }
  0x4d   :  { %507 = vmatpush.msrb.mxu2 %v2007_v13  ;;  %598 = vmatpush.msrb.mxu3 %v597_v17  ;;  %2883 = vst [vmem:[#allocation18_spill] sm:$0xff] %v2137_v4  ;;  %v96_v17 = vld [vmem:[#allocation6 + $0x78] sm:$0xff] }
  0x4e   :  { %431 = vmatpush.msrb.mxu0 %v2881_v61  ;;  %466 = vmatpush.msrb.mxu1 %v1781_v28  ;;  %v614_v28 = vsub.f32 %v2097_v22, %v613_v9  ;;  %v94_v61 = vld [vmem:[#allocation6 + $0x68] sm:$0xff] }
  0x4f   :  { %509 = vmatpush.msrb.mxu2 %v2019_v45  ;;  %604 = vmatpush.msrb.mxu3 %v603_v25  ;;  %v2299_v25 = vand.u32 4294901760, %v96_v17 }
  0x50   :  { %435 = vmatpush.msrb.mxu0 %v2882_v3  ;;  %468 = vmatpush.msrb.mxu1 %v1799_v35  ;;  %v609_v35 = vand.u32 4294901760, %v608_v1  ;;  %v615_v49 = vand.u32 4294901760, %v614_v28 }
  0x51   :  { %511 = vmatpush.msrb.mxu2 %v2032_v47  ;;  %182 = vmatmul.f32.vlgmr.msra.gmra.mxu0 %v2131_v26 }
  0x52   :  { %439 = vmatpush.msrb.mxu0 %v2884_v52  ;;  %470 = vmatpush.msrb.mxu1 %v1811_v41  ;;  %v2152_v41 = vand.u32 4294901760, %v2137_v4  ;;  %v92_v52 = vld [vmem:[#allocation6 + $0x58] sm:$0xff] }
  0x53   :  { %513 = vmatpush.msrb.mxu2 %v2055_v6  ;;  %610 = vmatpush.msrb.mxu3 %v609_v35 }
  0x54   :  { %443 = vmatpush.msrb.mxu0 %v2885_v39  ;;  %472 = vmatpush.msrb.mxu1 %v1827_v50  ;;  %2886 = vst [vmem:[#allocation19_spill] sm:$0xff] %v2152_v41  ;;  %v621_v50 = vand.u32 4294901760, %v620_v5  ;;  %v521_v55 = vsub.f32 %v2137_v4, %v2152_v41 }
  0x55   :  { %515 = vmatpush.msrb.mxu2 %v2071_v15  ;;  %616 = vmatpush.msrb.mxu3 %v615_v49 }
  0x56   :  { %630 = vmatpush.msra.mxu0 %v1891_v43  ;;  %474 = vmatpush.msrb.mxu1 %v1842_v57  ;;  %v2887_v57 = vand.u32 4294901760, %v1891_v43  ;;  %v2171_v11 = vand.u32 4294901760, %v521_v55  ;;  %v2892_v43 = vand.u32 4294901760, %v1937_v58 }
  0x57   :  { %337 = vmatmul.f32.vlgmr.msra.gmra.mxu2 %v2069_v0  ;;  %376 = vmatmul.f32.vlgmr.msra.gmra.mxu3 %v2094_v59 }
  0x58   :  { %633 = vmatpush.msra.mxu0 %v1906_v56  ;;  %476 = vmatpush.msrb.mxu1 %v1851_v63  ;;  %v2888_v63 = vand.u32 4294901760, %v1906_v56  ;;  %2889 = vst [vmem:[#allocation20_spill] sm:$0xff] %v2171_v11  ;;  %v2899_v56 = vand.u32 4294901760, %v2030_v48 }
  0x59   :  { %517 = vmatpush.msrb.mxu2 %v2087_v46  ;;  %622 = vmatpush.msrb.mxu3 %v621_v50  ;;  %v2326_v50 = vsub.f32 %v96_v17, %v2299_v25  ;;  %v144_v17 = vld [vmem:[#allocation6 + $0x1f8] sm:$0xff] }
  0x5a   :  { %636 = vmatpush.msra.mxu0 %v1924_v38  ;;  %478 = vmatpush.msrb.mxu1 %v1866_v18  ;;  %v2891_v18 = vand.u32 4294901760, %v1924_v38 }
  0x5b   :  { %724 = vmatpush.msra.mxu2 %v2887_v57  ;;  %283 = vmatmul.f32.vlgmr.msra.gmra.mxu1 %v2045_v32 }
  0x5c   :  { %639 = vmatpush.msra.mxu0 %v1937_v58  ;;  %791 = vmatpush.msra.mxu3 %v1860_v8  ;;  %v2894_v58 = vand.u32 4294901760, %v1969_v24 }
  0x5d   :  { %728 = vmatpush.msra.mxu2 %v2888_v63  ;;  %480 = vmatpush.msrb.mxu1 %v2890_v62  ;;  %v2332_v63 = vand.u32 4294901760, %v92_v52 }
  0x5e   :  { %642 = vmatpush.msra.mxu0 %v1954_v33  ;;  %793 = vmatpush.msra.mxu3 %v1875_v31 }
  0x5f   :  { %683 = vmatpush.msra.mxu1 %v1860_v8  ;;  %732 = vmatpush.msra.mxu2 %v2891_v18  ;;  %v2893_v8 = vand.u32 4294901760, %v1954_v33  ;;  %v2895_v33 = vand.u32 4294901760, %v1975_v23 }
  0x60   :  { %523 = vmatmul.f32.vlgmr.msrb.gmra.mxu2 %v2171_v11  ;;  %645 = vmatpush.msra.mxu0 %v1969_v24  ;;  %v112_v24 = vld [vmem:[#allocation6 + $0xf8] sm:$0xff] }
  0x61   :  { %685 = vmatpush.msra.mxu1 %v1875_v31  ;;  %736 = vmatpush.msra.mxu2 %v2892_v43  ;;  %v2896_v31 = vand.u32 4294901760, %v1988_v36  ;;  %v2219_v38 = vand.u32 4294901760, %v112_v24  ;;  %v88_v43 = vld [vmem:[#allocation6 + $0x38] sm:$0xff] }
  0x62   :  { %795 = vmatpush.msra.mxu3 %v1898_v54  ;;  %445 = vmatmul.f32.vlgmr.msrb.gmra.mxu0 %v2045_v32 }
  0x63   :  { %624 = vmatmul.f32.vlgmr.msrb.gmra.mxu3 %v2117_v34  ;;  %648 = vmatpush.msra.mxu0 %v1975_v23  ;;  %v110_v23 = vld [vmem:[#allocation6 + $0xe8] sm:$0xff] }
  0x64   :  { %687 = vmatpush.msra.mxu1 %v1898_v54  ;;  %740 = vmatpush.msra.mxu2 %v2893_v8  ;;  %v108_v54 = vld [vmem:[#allocation6 + $0xd8] sm:$0xff] }
  0x65   :  { %797 = vmatpush.msra.mxu3 %v1913_v12  ;;  %482 = vmatmul.f32.vlgmr.msrb.gmra.mxu1 %v2045_v32 }
  0x66   :  { %651 = vmatpush.msra.mxu0 %v1988_v36  ;;  %689 = vmatpush.msra.mxu1 %v1913_v12  ;;  %v2226_v12 = vand.u32 4294901760, %v110_v23  ;;  %v104_v36 = vld [vmem:[#allocation6 + $0xb8] sm:$0xff] }
  0x67   :  { %744 = vmatpush.msra.mxu2 %v2894_v58  ;;  %799 = vmatpush.msra.mxu3 %v1926_v7 }
  0x68   :  { %654 = vmatpush.msra.mxu0 %v2005_v44  ;;  %691 = vmatpush.msra.mxu1 %v1926_v7  ;;  %v2897_v7 = vand.u32 4294901760, %v2005_v44  ;;  %v2246_v44 = vsub.f32 %v110_v23, %v2226_v12 }
  0x69   :  { %748 = vmatpush.msra.mxu2 %v2895_v33  ;;  %801 = vmatpush.msra.mxu3 %v1939_v51 }
  0x6a   :  { %657 = vmatpush.msra.mxu0 %v2017_v2  ;;  %693 = vmatpush.msra.mxu1 %v1939_v51  ;;  %v2898_v51 = vand.u32 4294901760, %v2017_v2  ;;  %v102_v2 = vld [vmem:[#allocation6 + $0xa8] sm:$0xff] }
  0x6b   :  { %752 = vmatpush.msra.mxu2 %v2896_v31  ;;  %803 = vmatpush.msra.mxu3 %v1946_v60 }
  0x6c   :  { %660 = vmatpush.msra.mxu0 %v2030_v48  ;;  %695 = vmatpush.msra.mxu1 %v1946_v60  ;;  %v2233_v60 = vand.u32 4294901760, %v108_v54 }
  0x6d   :  { %756 = vmatpush.msra.mxu2 %v2897_v7  ;;  %805 = vmatpush.msra.mxu3 %v1961_v27  ;;  %v86_v7 = vld [vmem:[#allocation6 + $0x28] sm:$0xff] }
  0x6e   :  { %663 = vmatpush.msra.mxu0 %v2043_v42  ;;  %697 = vmatpush.msra.mxu1 %v1961_v27  ;;  %v106_v27 = vld [vmem:[#allocation6 + $0xc8] sm:$0xff]  ;;  %v100_v42 = vld [vmem:[#allocation6 + $0x98] sm:$0xff] }
  0x6f   :  { %760 = vmatpush.msra.mxu2 %v2898_v51  ;;  %807 = vmatpush.msra.mxu3 %v1982_v37 }
  0x70   :  { %666 = vmatpush.msra.mxu0 %v2058_v14  ;;  %699 = vmatpush.msra.mxu1 %v1982_v37  ;;  %v2236_v37 = vsub.f32 %v112_v24, %v2219_v38  ;;  %v2257_v14 = vsub.f32 %v108_v54, %v2233_v60  ;;  %v2830_v24 = vand.u32 4294901760, %v2326_v50  ;;  %v2354_v54 = vand.u32 4294901760, %v88_v43 }
  0x71   :  { %764 = vmatpush.msra.mxu2 %v2899_v56  ;;  %809 = vmatpush.msra.mxu3 %v1995_v30  ;;  %v2357_v56 = vsub.f32 %v92_v52, %v2332_v63 }
  0x72   :  { %669 = vmatpush.msra.mxu0 %v2082_v16  ;;  %701 = vmatpush.msra.mxu1 %v1995_v30  ;;  %v2243_v30 = vand.u32 4294901760, %v106_v27  ;;  %v2842_v48 = vand.u32 4294901760, %v2236_v37  ;;  %v98_v16 = vld [vmem:[#allocation6 + $0x88] sm:$0xff] }
  0x73   :  { %768 = vmatpush.msra.mxu2 %v595_v21  ;;  %811 = vmatpush.msra.mxu3 %v2007_v13  ;;  %v2840_v21 = vand.u32 4294901760, %v2246_v44  ;;  %v2831_v52 = vand.u32 4294901760, %v2357_v56 }
  0x74   :  { %672 = vmatpush.msra.mxu0 %v2097_v22  ;;  %703 = vmatpush.msra.mxu1 %v2007_v13  ;;  %v2253_v13 = vand.u32 4294901760, %v104_v36  ;;  %v2278_v22 = vand.u32 4294901760, %v100_v42 }
  0x75   :  { %772 = vmatpush.msra.mxu2 %v601_v29  ;;  %813 = vmatpush.msra.mxu3 %v2019_v45  ;;  %v2268_v29 = vsub.f32 %v106_v27, %v2243_v30 }
  0x76   :  { %675 = vmatpush.msra.mxu0 %v2111_v53  ;;  %705 = vmatpush.msra.mxu1 %v2019_v45  ;;  %v2264_v45 = vand.u32 4294901760, %v102_v2  ;;  %v2282_v19 = vsub.f32 %v104_v36, %v2253_v13  ;;  %v2291_v53 = vand.u32 4294901760, %v98_v16  ;;  %v2308_v28 = vsub.f32 %v100_v42, %v2278_v22  ;;  %v84_v36 = vld [vmem:[#allocation6 + $0x18] sm:$0xff] }
  0x77   :  { %776 = vmatpush.msra.mxu2 %v607_v40  ;;  %815 = vmatpush.msra.mxu3 %v2032_v47  ;;  %v2839_v40 = vand.u32 4294901760, %v2257_v14  ;;  %v2837_v20 = vand.u32 4294901760, %v2268_v29 }
  0x78   :  { %678 = vmatmul.f32.vlgmr.msra.gmra.mxu0 %v2137_v4  ;;  %707 = vmatpush.msra.mxu1 %v2032_v47  ;;  %v871_v47 = vsub.f32 %v2236_v37, %v2842_v48  ;;  %v2321_v49 = vsub.f32 %v98_v16, %v2291_v53  ;;  %v2833_v62 = vand.u32 4294901760, %v2308_v28  ;;  %v2366_v16 = vand.u32 4294901760, %v86_v7 }
  0x79   :  { %828 = vmatpush.msrb.mxu0 %v2219_v38  ;;  %780 = vmatpush.msra.mxu2 %v613_v9  ;;  %v2295_v9 = vsub.f32 %v102_v2, %v2264_v45  ;;  %v883_v3 = vsub.f32 %v2257_v14, %v2839_v40  ;;  %v889_v39 = vsub.f32 %v2268_v29, %v2837_v20 }
  0x7a   :  { %817 = vmatpush.msra.mxu3 %v2055_v6  ;;  %709 = vmatpush.msra.mxu1 %v2055_v6  ;;  %v877_v6 = vsub.f32 %v2246_v44, %v2840_v21  ;;  %v872_v1 = vand.u32 4294901760, %v871_v47  ;;  %v2832_v31 = vand.u32 4294901760, %v2321_v49  ;;  %v907_v51 = vsub.f32 %v2308_v28, %v2833_v62 }
  0x7b   :  { %830 = vmatpush.msrb.mxu0 %v2226_v12  ;;  %784 = vmatpush.msra.mxu2 %v619_v10  ;;  %v2836_v10 = vand.u32 4294901760, %v2282_v19  ;;  %v2834_v5 = vand.u32 4294901760, %v2295_v9  ;;  %v884_v55 = vand.u32 4294901760, %v883_v3  ;;  %v890_v8 = vand.u32 4294901760, %v889_v39 }
  0x7c   :  { %819 = vmatpush.msra.mxu3 %v2071_v15  ;;  %786 = vmatmul.f32.vlgmr.msra.gmra.mxu2 %v2117_v34  ;;  %v878_v35 = vand.u32 4294901760, %v877_v6  ;;  %v913_v42 = vsub.f32 %v2321_v49, %v2832_v31  ;;  %v919_v6 = vsub.f32 %v2326_v50, %v2830_v24  ;;  %v2377_v3 = vand.u32 4294901760, %v84_v36  ;;  %v138_v24 = vld [vmem:[#allocation6 + $0x1c8] sm:$0xff] }
  0x7d   :  { %832 = vmatpush.msrb.mxu0 %v2233_v60  ;;  %971 = vmatpush.msrb.mxu2 %v2236_v37  ;;  %v895_v57 = vsub.f32 %v2282_v19, %v2836_v10  ;;  %v901_v58 = vsub.f32 %v2295_v9, %v2834_v5  ;;  %v136_v5 = vld [vmem:[#allocation6 + $0x1b8] sm:$0xff] }
  0x7e   :  { %711 = vmatpush.msra.mxu1 %v2071_v15  ;;  %821 = vmatpush.msra.mxu3 %v2087_v46  ;;  %v2312_v15 = vand.u32 4294901760, %v94_v61  ;;  %v2439_v20 = vand.u32 4294901760, %v136_v5 }
  0x7f   :  { %823 = vmatmul.f32.vlgmr.msra.gmra.mxu3 %v2117_v34  ;;  %834 = vmatpush.msrb.mxu0 %v2243_v30  ;;  %v896_v23 = vand.u32 4294901760, %v895_v57  ;;  %v902_v2 = vand.u32 4294901760, %v901_v58  ;;  %v914_v57 = vand.u32 4294901760, %v913_v42  ;;  %v2395_v58 = vsub.f32 %v86_v7, %v2366_v16 }
  0x80   :  { %974 = vmatpush.msrb.mxu2 %v2246_v44  ;;  %1024 = vmatpush.msrb.mxu3 %v2219_v38  ;;  %v2338_v18 = vsub.f32 %v94_v61, %v2312_v15  ;;  %v82_v61 = vld [vmem:[#allocation6 + $0x8] sm:$0xff]  ;;  %v2902_v34 = vand.u32 4294901760, %v2236_v37 }
  0x81   :  { %713 = vmatpush.msra.mxu1 %v2087_v46  ;;  %836 = vmatpush.msrb.mxu0 %v2253_v13  ;;  %v90_v46 = vld [vmem:[#allocation6 + $0x48] sm:$0xff] }
  0x82   :  { %717 = vmatmul.f32.vlgmr.msra.gmra.mxu1 %v2152_v41  ;;  %977 = vmatpush.msrb.mxu2 %v2257_v14  ;;  %v2344_v33 = vand.u32 4294901760, %v90_v46  ;;  %v2829_v27 = vand.u32 4294901760, %v2338_v18 }
  0x83   :  { %873 = vmatpush.msrb.mxu1 %v872_v1  ;;  %1026 = vmatpush.msrb.mxu3 %v2226_v12  ;;  %v908_v1 = vand.u32 4294901760, %v907_v51  ;;  %v140_v51 = vld [vmem:[#allocation6 + $0x1d8] sm:$0xff] }
  0x84   :  { %838 = vmatpush.msrb.mxu0 %v2264_v45  ;;  %980 = vmatpush.msrb.mxu2 %v2268_v29  ;;  %v2369_v47 = vsub.f32 %v90_v46, %v2344_v33  ;;  %v925_v39 = vsub.f32 %v2338_v18, %v2829_v27  ;;  %v2388_v46 = vand.u32 4294901760, %v144_v17  ;;  %v2405_v27 = vsub.f32 %v84_v36, %v2377_v3 }
  0x85   :  { %879 = vmatpush.msrb.mxu1 %v878_v35  ;;  %1028 = vmatpush.msrb.mxu3 %v2233_v60  ;;  %v2381_v35 = vsub.f32 %v88_v43, %v2354_v54  ;;  %v2841_v36 = vand.u32 4294901760, %v2395_v58  ;;  %v2422_v62 = vand.u32 4294901760, %v140_v51 }
  0x86   :  { %840 = vmatpush.msrb.mxu0 %v2278_v22  ;;  %983 = vmatpush.msrb.mxu2 %v2282_v19  ;;  %v2835_v43 = vand.u32 4294901760, %v2369_v47 }
  0x87   :  { %885 = vmatpush.msrb.mxu1 %v884_v55  ;;  %1030 = vmatpush.msrb.mxu3 %v2243_v30  ;;  %v142_v55 = vld [vmem:[#allocation6 + $0x1e8] sm:$0xff]  ;;  %v2838_v42 = vand.u32 4294901760, %v2381_v35  ;;  %v2447_v40 = vsub.f32 %v140_v51, %v2422_v62 }
  0x88   :  { %842 = vmatpush.msrb.mxu0 %v2291_v53  ;;  %986 = vmatpush.msrb.mxu2 %v2295_v9  ;;  %v2407_v7 = vand.u32 4294901760, %v142_v55 }
  0x89   :  { %891 = vmatpush.msrb.mxu1 %v890_v8  ;;  %1032 = vmatpush.msrb.mxu3 %v2253_v13  ;;  %v2391_v8 = vand.u32 4294901760, %v82_v61 }
  0x8a   :  { %844 = vmatpush.msrb.mxu0 %v2299_v25  ;;  %989 = vmatpush.msrb.mxu2 %v2308_v28  ;;  %2901 = vst [vmem:[#allocation21_spill] sm:$0xff] %v2407_v7 }
  0x8b   :  { %897 = vmatpush.msrb.mxu1 %v896_v23  ;;  %1034 = vmatpush.msrb.mxu3 %v2264_v45  ;;  %2900 = vst [vmem:[#allocation14_spill] sm:$0xff] %v2391_v8  ;;  %v920_v23 = vand.u32 4294901760, %v919_v6  ;;  %v926_v6 = vand.u32 4294901760, %v925_v39  ;;  %v2420_v31 = vsub.f32 %v82_v61, %v2391_v8  ;;  %v2843_v61 = vand.u32 4294901760, %v2405_v27 }
  0x8c   :  { %846 = vmatpush.msrb.mxu0 %v2312_v15  ;;  %992 = vmatpush.msrb.mxu2 %v2321_v49 }
  0x8d   :  { %903 = vmatpush.msrb.mxu1 %v902_v2  ;;  %1036 = vmatpush.msrb.mxu3 %v2278_v22  ;;  %v931_v2 = vsub.f32 %v2357_v56, %v2831_v52  ;;  %v937_v52 = vsub.f32 %v2369_v47, %v2835_v43  ;;  %v2434_v43 = vsub.f32 %v142_v55, %v2407_v7  ;;  %v2849_v55 = vand.u32 4294901760, %v2420_v31 }
  0x8e   :  { %848 = vmatpush.msrb.mxu0 %v2332_v63  ;;  %995 = vmatpush.msrb.mxu2 %v2326_v50 }
  0x8f   :  { %909 = vmatpush.msrb.mxu1 %v908_v1  ;;  %1038 = vmatpush.msrb.mxu3 %v2291_v53  ;;  %v2412_v1 = vsub.f32 %v144_v17, %v2388_v46  ;;  %v2426_v17 = vand.u32 4294901760, %v138_v24  ;;  %v932_v39 = vand.u32 4294901760, %v931_v2  ;;  %v938_v2 = vand.u32 4294901760, %v937_v52 }
  0x90   :  { %850 = vmatpush.msrb.mxu0 %v2344_v33  ;;  %998 = vmatpush.msrb.mxu2 %v2338_v18  ;;  %v961_v48 = vsub.f32 %v2420_v31, %v2849_v55 }
  0x91   :  { %915 = vmatpush.msrb.mxu1 %v914_v57  ;;  %1040 = vmatpush.msrb.mxu3 %v2299_v25  ;;  %v943_v57 = vsub.f32 %v2381_v35, %v2838_v42  ;;  %v2848_v10 = vand.u32 4294901760, %v2412_v1  ;;  %v949_v42 = vsub.f32 %v2395_v58, %v2841_v36  ;;  %v2452_v21 = vsub.f32 %v138_v24, %v2426_v17 }
  0x92   :  { %852 = vmatpush.msrb.mxu0 %v2354_v54  ;;  %1001 = vmatpush.msrb.mxu2 %v2357_v56  ;;  %v955_v36 = vsub.f32 %v2405_v27, %v2843_v61 }
  0x93   :  { %921 = vmatpush.msrb.mxu1 %v920_v23  ;;  %1042 = vmatpush.msrb.mxu3 %v2312_v15  ;;  %v134_v23 = vld [vmem:[#allocation6 + $0x1a8] sm:$0xff]  ;;  %v944_v52 = vand.u32 4294901760, %v943_v57  ;;  %v1212_v24 = vsub.f32 %v2412_v1, %v2848_v10  ;;  %v950_v61 = vand.u32 4294901760, %v949_v42  ;;  %v128_v10 = vld [vmem:[#allocation6 + $0x178] sm:$0xff] }
  0x94   :  { %854 = vmatpush.msrb.mxu0 %v2366_v16  ;;  %1004 = vmatpush.msrb.mxu2 %v2369_v47  ;;  %v2459_v51 = vand.u32 4294901760, %v134_v23  ;;  %v130_v57 = vld [vmem:[#allocation6 + $0x188] sm:$0xff]  ;;  %v956_v42 = vand.u32 4294901760, %v955_v36  ;;  %v962_v36 = vand.u32 4294901760, %v961_v48  ;;  %v2500_v59 = vand.u32 4294901760, %v128_v10 }
  0x95   :  { %927 = vmatpush.msrb.mxu1 %v926_v6  ;;  %1044 = vmatpush.msrb.mxu3 %v2332_v63  ;;  %v132_v6 = vld [vmem:[#allocation6 + $0x198] sm:$0xff]  ;;  %v2487_v11 = vand.u32 4294901760, %v130_v57  ;;  %v1213_v37 = vand.u32 4294901760, %v1212_v24  ;;  %v2907_v24 = vand.u32 4294901760, %v2452_v21 }
  0x96   :  { %856 = vmatpush.msrb.mxu0 %v2377_v3  ;;  %1007 = vmatpush.msrb.mxu2 %v2381_v35  ;;  %v2474_v4 = vand.u32 4294901760, %v132_v6  ;;  %v2485_v41 = vsub.f32 %v134_v23, %v2459_v51 }
  0x97   :  { %933 = vmatpush.msrb.mxu1 %v932_v39  ;;  %1046 = vmatpush.msrb.mxu3 %v2344_v33  ;;  %v2467_v39 = vsub.f32 %v136_v5, %v2439_v20  ;;  %v126_v5 = vld [vmem:[#allocation6 + $0x168] sm:$0xff] }
  0x98   :  { %858 = vmatpush.msrb.mxu0 %v2391_v8  ;;  %1010 = vmatpush.msrb.mxu2 %v2395_v58  ;;  %v2498_v32 = vsub.f32 %v132_v6, %v2474_v4  ;;  %v2511_v6 = vsub.f32 %v130_v57, %v2487_v11  ;;  %v2523_v57 = vsub.f32 %v128_v10, %v2500_v59 }
  0x99   :  { %939 = vmatpush.msrb.mxu1 %v938_v2  ;;  %1048 = vmatpush.msrb.mxu3 %v2354_v54  ;;  %v2903_v2 = vand.u32 4294901760, %v2434_v43 }
  0x9a   :  { %1065 = vmatpush.msra.mxu0 %v2902_v34  ;;  %1013 = vmatpush.msrb.mxu2 %v2405_v27  ;;  %v2904_v34 = vand.u32 4294901760, %v2246_v44  ;;  %v2906_v44 = vand.u32 4294901760, %v2257_v14  ;;  %v2908_v14 = vand.u32 4294901760, %v2268_v29  ;;  %v2910_v29 = vand.u32 4294901760, %v2282_v19 }
  0x9b   :  { %945 = vmatpush.msrb.mxu1 %v944_v52  ;;  %1050 = vmatpush.msrb.mxu3 %v2366_v16  ;;  %v1218_v55 = vsub.f32 %v2434_v43, %v2903_v2  ;;  %v2905_v2 = vand.u32 4294901760, %v2447_v40  ;;  %v2513_v52 = vand.u32 4294901760, %v126_v5  ;;  %v2912_v19 = vand.u32 4294901760, %v2295_v9 }
  0x9c   :  { %1069 = vmatpush.msra.mxu0 %v2904_v34  ;;  %1016 = vmatpush.msrb.mxu2 %v2420_v31  ;;  %v124_v34 = vld [vmem:[#allocation6 + $0x158] sm:$0xff]  ;;  %v2913_v9 = vand.u32 4294901760, %v2308_v28 }
  0x9d   :  { %951 = vmatpush.msrb.mxu1 %v950_v61  ;;  %1052 = vmatpush.msrb.mxu3 %v2377_v3  ;;  %v1224_v23 = vsub.f32 %v2447_v40, %v2905_v2  ;;  %v1230_v61 = vsub.f32 %v2452_v21, %v2907_v24  ;;  %v1219_v48 = vand.u32 4294901760, %v1218_v55  ;;  %v2857_v2 = vand.u32 4294901760, %v2498_v32 }
  0x9e   :  { %1073 = vmatpush.msra.mxu0 %v2906_v44  ;;  %1169 = vmatpush.msra.mxu2 %v2388_v46  ;;  %v2909_v44 = vand.u32 4294901760, %v2467_v39  ;;  %v2536_v10 = vsub.f32 %v126_v5, %v2513_v52 }
  0x9f   :  { %957 = vmatpush.msrb.mxu1 %v956_v42  ;;  %1054 = vmatpush.msrb.mxu3 %v2391_v8  ;;  %v122_v42 = vld [vmem:[#allocation6 + $0x148] sm:$0xff]  ;;  %v1225_v55 = vand.u32 4294901760, %v1224_v23  ;;  %v2525_v8 = vand.u32 4294901760, %v124_v34  ;;  %v1253_v23 = vand.u32 4294901760, %v2511_v6 }
  0xa0   :  { %1077 = vmatpush.msra.mxu0 %v2908_v14  ;;  %1171 = vmatpush.msra.mxu2 %v2407_v7  ;;  %v1236_v24 = vsub.f32 %v2467_v39, %v2909_v44  ;;  %v1231_v14 = vand.u32 4294901760, %v1230_v61  ;;  %v120_v7 = vld [vmem:[#allocation6 + $0x138] sm:$0xff]  ;;  %v2538_v44 = vand.u32 4294901760, %v122_v42  ;;  %v1248_v61 = vsub.f32 %v2498_v32, %v2857_v2 }
  0xa1   :  { %1214 = vmatpush.msra.mxu3 %v1213_v37  ;;  %963 = vmatpush.msrb.mxu1 %v962_v36  ;;  %v2911_v37 = vand.u32 4294901760, %v2485_v41  ;;  %v2549_v5 = vsub.f32 %v124_v34, %v2525_v8  ;;  %v2914_v2 = vand.u32 4294901760, %v2321_v49  ;;  %v2915_v49 = vand.u32 4294901760, %v2326_v50 }
  0xa2   :  { %1081 = vmatpush.msra.mxu0 %v2910_v29  ;;  %1173 = vmatpush.msra.mxu2 %v2422_v62  ;;  %v2551_v29 = vand.u32 4294901760, %v120_v7  ;;  %v2562_v34 = vsub.f32 %v122_v42, %v2538_v44  ;;  %v1249_v28 = vand.u32 4294901760, %v1248_v61 }
  0xa3   :  { %1132 = vmatpush.msra.mxu1 %v2219_v38  ;;  %1220 = vmatpush.msra.mxu3 %v1219_v48  ;;  %v1242_v36 = vsub.f32 %v2485_v41, %v2911_v37  ;;  %v1237_v38 = vand.u32 4294901760, %v1236_v24  ;;  %v1259_v48 = vand.u32 4294901760, %v2523_v57  ;;  %v118_v37 = vld [vmem:[#allocation6 + $0x128] sm:$0xff]  ;;  %v1254_v24 = vsub.f32 %v2511_v6, %v1253_v23 }
  0xa4   :  { %1085 = vmatpush.msra.mxu0 %v2912_v19  ;;  %1175 = vmatpush.msra.mxu2 %v2426_v17  ;;  %v116_v19 = vld [vmem:[#allocation6 + $0x118] sm:$0xff]  ;;  %v2575_v42 = vsub.f32 %v120_v7, %v2551_v29  ;;  %v2916_v7 = vand.u32 4294901760, %v2338_v18  ;;  %v2917_v18 = vand.u32 4294901760, %v2357_v56 }
  0xa5   :  { %1134 = vmatpush.msra.mxu1 %v2226_v12  ;;  %1226 = vmatpush.msra.mxu3 %v1225_v55  ;;  %v1243_v12 = vand.u32 4294901760, %v1242_v36  ;;  %v1265_v55 = vand.u32 4294901760, %v2536_v10  ;;  %v1271_v36 = vand.u32 4294901760, %v2549_v5 }
  0xa6   :  { %1089 = vmatpush.msra.mxu0 %v2913_v9  ;;  %1177 = vmatpush.msra.mxu2 %v2439_v20  ;;  %v1277_v9 = vand.u32 4294901760, %v2562_v34 }
  0xa7   :  { %1136 = vmatpush.msra.mxu1 %v2233_v60  ;;  %1232 = vmatpush.msra.mxu3 %v1231_v14  ;;  %v2567_v60 = vand.u32 4294901760, %v118_v37  ;;  %v1260_v14 = vsub.f32 %v2523_v57, %v1259_v48  ;;  %v1266_v61 = vsub.f32 %v2536_v10, %v1265_v55 }
  0xa8   :  { %1093 = vmatpush.msra.mxu0 %v2914_v2  ;;  %1179 = vmatpush.msra.mxu2 %v2459_v51  ;;  %v114_v2 = vld [vmem:[#allocation6 + $0x108] sm:$0xff] }
  0xa9   :  { %1138 = vmatpush.msra.mxu1 %v2243_v30  ;;  %1238 = vmatpush.msra.mxu3 %v1237_v38  ;;  %v2580_v30 = vand.u32 4294901760, %v116_v19  ;;  %v1255_v38 = vand.u32 4294901760, %v1254_v24  ;;  %v1261_v50 = vand.u32 4294901760, %v1260_v14  ;;  %v1283_v24 = vand.u32 4294901760, %v2575_v42 }
  0xaa   :  { %1097 = vmatpush.msra.mxu0 %v2915_v49  ;;  %1181 = vmatpush.msra.mxu2 %v2474_v4  ;;  %v2598_v49 = vand.u32 4294901760, %v114_v2  ;;  %v2918_v14 = vand.u32 4294901760, %v2369_v47 }
  0xab   :  { %1140 = vmatpush.msra.mxu1 %v2253_v13  ;;  %1244 = vmatpush.msra.mxu3 %v1243_v12  ;;  %v2591_v13 = vsub.f32 %v118_v37, %v2567_v60  ;;  %v1272_v12 = vsub.f32 %v2549_v5, %v1271_v36  ;;  %v1267_v37 = vand.u32 4294901760, %v1266_v61  ;;  %v2919_v61 = vand.u32 4294901760, %v2381_v35 }
  0xac   :  { %1101 = vmatpush.msra.mxu0 %v2916_v7  ;;  %1183 = vmatpush.msra.mxu2 %v2487_v11  ;;  %v2920_v7 = vand.u32 4294901760, %v2395_v58 }
  0xad   :  { %1142 = vmatpush.msra.mxu1 %v2264_v45  ;;  %1250 = vmatpush.msra.mxu3 %v1249_v28  ;;  %v2604_v45 = vsub.f32 %v116_v19, %v2580_v30  ;;  %v1278_v28 = vsub.f32 %v2562_v34, %v1277_v9  ;;  %v1289_v56 = vand.u32 4294901760, %v2591_v13  ;;  %v1284_v19 = vsub.f32 %v2575_v42, %v1283_v24 }
  0xae   :  { %1105 = vmatpush.msra.mxu0 %v2917_v18  ;;  %1185 = vmatpush.msra.mxu2 %v2500_v59  ;;  %v2930_v18 = vld [vmem:[#allocation20_spill] sm:$0xff] }
  0xaf   :  { %1144 = vmatpush.msra.mxu1 %v2278_v22  ;;  %1256 = vmatpush.msra.mxu3 %v1255_v38  ;;  %v1273_v22 = vand.u32 4294901760, %v1272_v12  ;;  %v2619_v38 = vsub.f32 %v114_v2, %v2598_v49  ;;  %v1279_v47 = vand.u32 4294901760, %v1278_v28  ;;  %v1290_v2 = vsub.f32 %v2591_v13, %v1289_v56 }
  0xb0   :  { %1109 = vmatpush.msra.mxu0 %v2918_v14  ;;  %1187 = vmatpush.msra.mxu2 %v2513_v52  ;;  %v1285_v35 = vand.u32 4294901760, %v1284_v19 }
  0xb1   :  { %1146 = vmatpush.msra.mxu1 %v2291_v53  ;;  %1262 = vmatpush.msra.mxu3 %v1261_v50  ;;  %v1295_v53 = vand.u32 4294901760, %v2604_v45  ;;  %v2921_v50 = vand.u32 4294901760, %v2405_v27  ;;  %v1291_v12 = vand.u32 4294901760, %v1290_v2 }
  0xb2   :  { %1113 = vmatpush.msra.mxu0 %v2919_v61  ;;  %1189 = vmatpush.msra.mxu2 %v2525_v8 }
  0xb3   :  { %1148 = vmatpush.msra.mxu1 %v2299_v25  ;;  %1268 = vmatpush.msra.mxu3 %v1267_v37  ;;  %v1301_v25 = vand.u32 4294901760, %v2619_v38  ;;  %v1296_v58 = vsub.f32 %v2604_v45, %v1295_v53  ;;  %v2932_v37 = vld [vmem:[#allocation17_spill] sm:$0xff] }
  0xb4   :  { %1117 = vmatpush.msra.mxu0 %v2920_v7  ;;  %1191 = vmatpush.msra.mxu2 %v2538_v44 }
  0xb5   :  { %1150 = vmatpush.msra.mxu1 %v2312_v15  ;;  %1274 = vmatpush.msra.mxu3 %v1273_v22  ;;  %v2922_v15 = vand.u32 4294901760, %v2420_v31  ;;  %v1297_v27 = vand.u32 4294901760, %v1296_v58  ;;  %v2923_v31 = vld [vmem:[#allocation16_spill] sm:$0xff]  ;;  %v1519_v58 = vstv %s2748_s2 }
  0xb6   :  { %1121 = vmatpush.msra.mxu0 %v2921_v50  ;;  %1193 = vmatpush.msra.mxu2 %v2551_v29  ;;  %v1509_v50 = vstv %s2746_s1 }
  0xb7   :  { %1152 = vmatpush.msra.mxu1 %v2332_v63  ;;  %1280 = vmatpush.msra.mxu3 %v1279_v47  ;;  %v1302_v63 = vsub.f32 %v2619_v38, %v1301_v25 }
  0xb8   :  { %1125 = vmatpush.msra.mxu0 %v2922_v15  ;;  %1195 = vmatpush.msra.mxu2 %v2567_v60 }
  0xb9   :  { %1154 = vmatpush.msra.mxu1 %v2344_v33  ;;  %1286 = vmatpush.msra.mxu3 %v1285_v35  ;;  %v1303_v33 = vand.u32 4294901760, %v1302_v63  ;;  %v1541_v63 = vstv %s2752_s28 }
  0xba   :  { %864 = vmatmul.f32.vlgmr.msrb.gmra.mxu0 %v2131_v26  ;;  %1197 = vmatpush.msra.mxu2 %v2580_v30  ;;  %v2924_v26 = vand.u32 4294901760, %v2412_v1 }
  0xbb   :  { %1156 = vmatpush.msra.mxu1 %v2354_v54  ;;  %1312 = vmatpush.msrb.mxu0 %v2412_v1  ;;  %v2925_v54 = vld [vmem:[#allocation15_spill] sm:$0xff]  ;;  %v2928_v1 = vand.u32 4294901760, %v2447_v40 }
  0xbc   :  { %1292 = vmatpush.msra.mxu3 %v1291_v12  ;;  %1019 = vmatmul.f32.vlgmr.msrb.gmra.mxu2 %v2069_v0  ;;  %v2926_v0 = vand.u32 4294901760, %v2434_v43  ;;  %v1530_v12 = vstv %s2750_s27 }
  0xbd   :  { %1315 = vmatpush.msrb.mxu0 %v2434_v43  ;;  %1158 = vmatpush.msra.mxu1 %v2366_v16  ;;  %v2927_v16 = vld [vmem:[#allocation14_spill] sm:$0xff]  ;;  %v2931_v43 = vand.u32 4294901760, %v2452_v21 }
  0xbe   :  { %1199 = vmatpush.msra.mxu2 %v2598_v49  ;;  %1298 = vmatpush.msra.mxu3 %v1297_v27 }
  0xbf   :  { %1058 = vmatmul.f32.vlgmr.msrb.gmra.mxu3 %v2923_v31  ;;  %1318 = vmatpush.msrb.mxu0 %v2447_v40  ;;  %v2933_v40 = vand.u32 4294901760, %v2467_v39 }
  0xc0   :  { %1406 = vmatpush.msrb.mxu2 %v2924_v26  ;;  %1160 = vmatpush.msra.mxu1 %v2377_v3  ;;  %v2929_v3 = vld [vmem:[#allocation21_spill] sm:$0xff]  ;;  %v1511_v26 = vstv %s2756_s30 }
  0xc1   :  { %1304 = vmatpush.msra.mxu3 %v1303_v33  ;;  %965 = vmatmul.f32.vlgmr.msrb.gmra.mxu1 %v2925_v54  ;;  %v1552_v33 = vstv %s2754_s29 }
  0xc2   :  { %1321 = vmatpush.msrb.mxu0 %v2452_v21  ;;  %1410 = vmatpush.msrb.mxu2 %v2926_v0  ;;  %v2934_v21 = vand.u32 4294901760, %v2485_v41  ;;  %v1532_v0 = vstv %s2760_s5 }
  0xc3   :  { %1473 = vmatpush.msrb.mxu3 %v2388_v46  ;;  %1162 = vmatpush.msra.mxu1 %v2927_v16  ;;  %v1543_v16 = vstv %s2762_s6 }
  0xc4   :  { %1324 = vmatpush.msrb.mxu0 %v2467_v39  ;;  %1414 = vmatpush.msrb.mxu2 %v2928_v1 }
  0xc5   :  { %1365 = vmatpush.msrb.mxu1 %v2388_v46  ;;  %1475 = vmatpush.msrb.mxu3 %v2929_v3 }
  0xc6   :  { %1205 = vmatmul.f32.vlgmr.msra.gmra.mxu2 %v2930_v18  ;;  %1327 = vmatpush.msrb.mxu0 %v2485_v41 }
  0xc7   :  { %1367 = vmatpush.msrb.mxu1 %v2929_v3  ;;  %1418 = vmatpush.msrb.mxu2 %v2931_v43  ;;  %v1554_v43 = vstv %s2764_s7 }
  0xc8   :  { %1477 = vmatpush.msrb.mxu3 %v2422_v62  ;;  %1127 = vmatmul.f32.vlgmr.msra.gmra.mxu0 %v2925_v54 }
  0xc9   :  { %1306 = vmatmul.f32.vlgmr.msra.gmra.mxu3 %v2932_v37  ;;  %1330 = vmatpush.msrb.mxu0 %v2498_v32 }
  0xca   :  { %1369 = vmatpush.msrb.mxu1 %v2422_v62  ;;  %1422 = vmatpush.msrb.mxu2 %v2933_v40  ;;  %v2935_v62 = vand.u32 4294901760, %v2498_v32  ;;  %v2936_v32 = vld [vmem:[#allocation18_spill] sm:$0xff] }
  0xcb   :  { %1479 = vmatpush.msrb.mxu3 %v2426_v17  ;;  %1164 = vmatmul.f32.vlgmr.msra.gmra.mxu1 %v2925_v54  ;;  %v1521_v54 = vstv %s2758_s4 }
  0xcc   :  { %1333 = vmatpush.msrb.mxu0 %v2511_v6  ;;  %1371 = vmatpush.msrb.mxu1 %v2426_v17 }
  0xcd   :  { %1426 = vmatpush.msrb.mxu2 %v2934_v21  ;;  %1481 = vmatpush.msrb.mxu3 %v2439_v20  ;;  %v1514_v21 = vstv %s2766_s8 }
  0xce   :  { %1336 = vmatpush.msrb.mxu0 %v2523_v57  ;;  %1373 = vmatpush.msrb.mxu1 %v2439_v20  ;;  %v183_v41 = vpop.f32.mrf.mxu0 }
  0xcf   :  { %1430 = vmatpush.msrb.mxu2 %v2935_v62  ;;  %1483 = vmatpush.msrb.mxu3 %v2459_v51 }
  0xd0   :  { %1339 = vmatpush.msrb.mxu0 %v2536_v10  ;;  %1375 = vmatpush.msrb.mxu1 %v2459_v51 }
  0xd1   :  { %1434 = vmatpush.msrb.mxu2 %v1253_v23  ;;  %1485 = vmatpush.msrb.mxu3 %v2474_v4 }
  0xd2   :  { %1342 = vmatpush.msrb.mxu0 %v2549_v5  ;;  %1377 = vmatpush.msrb.mxu1 %v2474_v4 }
  0xd3   :  { %1438 = vmatpush.msrb.mxu2 %v1259_v48  ;;  %1487 = vmatpush.msrb.mxu3 %v2487_v11 }
  0xd4   :  { %1345 = vmatpush.msrb.mxu0 %v2562_v34  ;;  %1379 = vmatpush.msrb.mxu1 %v2487_v11 }
  0xd5   :  { %1442 = vmatpush.msrb.mxu2 %v1265_v55  ;;  %1489 = vmatpush.msrb.mxu3 %v2500_v59 }
  0xd6   :  { %1348 = vmatpush.msrb.mxu0 %v2575_v42  ;;  %1381 = vmatpush.msrb.mxu1 %v2500_v59  ;;  %v2937_v59 = vld [vmem:[#allocation19_spill] sm:$0xff] }
  0xd7   :  { %1446 = vmatpush.msrb.mxu2 %v1271_v36  ;;  %1491 = vmatpush.msrb.mxu3 %v2513_v52 }
  0xd8   :  { %1351 = vmatpush.msrb.mxu0 %v2591_v13  ;;  %1383 = vmatpush.msrb.mxu1 %v2513_v52  ;;  %v284_v4 = vpop.f32.mrf.mxu1 }
  0xd9   :  { %1450 = vmatpush.msrb.mxu2 %v1277_v9  ;;  %1493 = vmatpush.msrb.mxu3 %v2525_v8  ;;  %v285_v6 = vadd.f32 %v284_v4, %v183_v41 }
  0xda   :  { %1354 = vmatpush.msrb.mxu0 %v2604_v45  ;;  %1385 = vmatpush.msrb.mxu1 %v2525_v8  ;;  %v338_v11 = vpop.f32.mrf.mxu2  ;;  %v377_v20 = vpop.f32.mrf.mxu3 }
  0xdb   :  { %1454 = vmatpush.msrb.mxu2 %v1283_v24  ;;  %1495 = vmatpush.msrb.mxu3 %v2538_v44  ;;  %v339_v23 = vadd.f32 %v338_v11, %v285_v6  ;;  %v1524_v11 = vstv %s2768_s9 }
  0xdc   :  { %1357 = vmatpush.msrb.mxu0 %v2619_v38  ;;  %1387 = vmatpush.msrb.mxu1 %v2538_v44 }
  0xdd   :  { %1458 = vmatpush.msrb.mxu2 %v1289_v56  ;;  %1497 = vmatpush.msrb.mxu3 %v2551_v29 }
  0xde   :  { %1360 = vmatmul.f32.vlgmr.msrb.gmra.mxu0 %v2936_v32  ;;  %1389 = vmatpush.msrb.mxu1 %v2551_v29  ;;  %v378_v29 = vadd.f32 %v377_v20, %v339_v23  ;;  %v1535_v20 = vstv %s2770_s10 }
  0xdf   :  { %1462 = vmatpush.msrb.mxu2 %v1295_v53  ;;  %1499 = vmatpush.msrb.mxu3 %v2567_v60  ;;  %v446_v8 = vpop.f32.mrf.mxu0 }
  0xe0   :  { %1391 = vmatpush.msrb.mxu1 %v2567_v60  ;;  %v447_v60 = vadd.f32 %v446_v8, %v378_v29  ;;  %v1527_v29 = vstv %s2787_s14 }
  0xe1   :  { %1466 = vmatpush.msrb.mxu2 %v1301_v25  ;;  %1501 = vmatpush.msrb.mxu3 %v2580_v30 }
  0xe2   :  { %1468 = vmatmul.f32.vlgmr.msrb.gmra.mxu2 %v2932_v37  ;;  %1393 = vmatpush.msrb.mxu1 %v2580_v30  ;;  %v483_v46 = vpop.f32.mrf.mxu1 }
  0xe3   :  { %1503 = vmatpush.msrb.mxu3 %v2598_v49  ;;  %v524_v17 = vpop.f32.mrf.mxu2  ;;  %v484_v30 = vadd.f32 %v483_v46, %v447_v60  ;;  %v1546_v46 = vstv %s2772_s11 }
  0xe4   :  { %1505 = vmatmul.f32.vlgmr.msrb.gmra.mxu3 %v2932_v37  ;;  %1395 = vmatpush.msrb.mxu1 %v2598_v49 }
  0xe5   :  { %1399 = vmatmul.f32.vlgmr.msrb.gmra.mxu1 %v2937_v59  ;;  %v525_v24 = vadd.f32 %v524_v17, %v484_v30 }
  0xe6   :  { %v625_v51 = vpop.f32.mrf.mxu3 }
  0xe7   :  { %v626_v28 = vadd.f32 %v625_v51, %v525_v24  ;;  %v1549_v24 = vstv %s2793_s16 }
  0xf5   :  { %v679_v52 = vpop.f32.mrf.mxu0 }
  0xf6   :  { %v680_v56 = vadd.f32 %v679_v52, %v626_v28 }
  0xff   :  { %v718_v39 = vpop.f32.mrf.mxu1  ;;  %v787_v57 = vpop.f32.mrf.mxu2 }
 0x100   :  { %v719_v19 = vadd.f32 %v718_v39, %v680_v56 }
 0x102   :  { %v824_v10 = vpop.f32.mrf.mxu3  ;;  %v788_v47 = vadd.f32 %v787_v57, %v719_v19  ;;  %v1557_v57 = vstv %s2776_s12 }
 0x104   :  { %v825_v25 = vadd.f32 %v824_v10, %v788_v47 }
 0x106   :  { %v1510_v1 = vmul.f32 %v1509_v50, %v825_v25  ;;  %v1520_v3 = vmul.f32 %v1519_v58, %v825_v25  ;;  %v1531_v37 = vmul.f32 %v1530_v12, %v825_v25  ;;  %v1542_v40 = vmul.f32 %v1541_v63, %v825_v25 }
 0x107   :  { %v1553_v62 = vmul.f32 %v1552_v33, %v825_v25 }
 0x137   :  { %v865_v48 = vpop.f32.mrf.mxu0 }
 0x13e   :  { %v966_v44 = vpop.f32.mrf.mxu1 }
 0x13f   :  { %v967_v5 = vadd.f32 %v966_v44, %v865_v48  ;;  %v1020_v55 = vpop.f32.mrf.mxu2 }
 0x141   :  { %v1021_v34 = vadd.f32 %v1020_v55, %v967_v5  ;;  %v1517_v5 = vstv %s2780_s13 }
 0x142   :  { %v1059_v36 = vpop.f32.mrf.mxu3 }
 0x143   :  { %v1060_v42 = vadd.f32 %v1059_v36, %v1021_v34 }
 0x145   :  { %v1128_v9 = vpop.f32.mrf.mxu0 }
 0x146   :  { %v1129_v13 = vadd.f32 %v1128_v9, %v1060_v42  ;;  %v1538_v42 = vstv %s2790_s15 }
 0x148   :  { %v1165_v49 = vpop.f32.mrf.mxu1 }
 0x149   :  { %v1166_v45 = vadd.f32 %v1165_v49, %v1129_v13  ;;  %v1206_v14 = vpop.f32.mrf.mxu2 }
 0x14b   :  { %v1207_v22 = vadd.f32 %v1206_v14, %v1166_v45  ;;  %v1560_v14 = vstv %s1603_s17 }
 0x14c   :  { %v1307_v38 = vpop.f32.mrf.mxu3 }
 0x14d   :  { %v1308_v53 = vadd.f32 %v1307_v38, %v1207_v22 }
 0x15b   :  { %v1361_v61 = vpop.f32.mrf.mxu0 }
 0x15c   :  { %v1362_v7 = vadd.f32 %v1361_v61, %v1308_v53  ;;  %v1563_v61 = vstv %s1604_s18 }
 0x162   :  { %v1400_v2 = vpop.f32.mrf.mxu1 }
 0x163   :  { %v1401_v35 = vadd.f32 %v1400_v2, %v1362_v7 }
 0x165   :  { %v1469_v15 = vpop.f32.mrf.mxu2 }
 0x166   :  { %v1470_v27 = vadd.f32 %v1469_v15, %v1401_v35 }
 0x167   :  { %v1506_v31 = vpop.f32.mrf.mxu3 }
 0x168   :  { %v1507_v18 = vadd.f32 %v1506_v31, %v1470_v27 }
 0x16a   :  { %v1512_v32 = vmul.f32 %v1511_v26, %v1507_v18  ;;  %v1522_v59 = vmul.f32 %v1521_v54, %v1507_v18  ;;  %v1533_v4 = vmul.f32 %v1532_v0, %v1507_v18  ;;  %v1544_v41 = vmul.f32 %v1543_v16, %v1507_v18 }
 0x16b   :  { %v1555_v8 = vmul.f32 %v1554_v43, %v1507_v18 }
 0x16c   :  { %v1513_v17 = vadd.f32 %v1512_v32, %v1510_v1  ;;  %v1523_v51 = vadd.f32 %v1522_v59, %v1520_v3  ;;  %v1534_v39 = vadd.f32 %v1533_v4, %v1531_v37  ;;  %v1545_v52 = vadd.f32 %v1544_v41, %v1542_v40 }
 0x16d   :  { %v1556_v6 = vadd.f32 %v1555_v8, %v1553_v62 }
 0x16e   :  { %v1515_v23 = vadd.f32 %v1514_v21, %v1513_v17  ;;  %v1525_v10 = vadd.f32 %v1524_v11, %v1523_v51  ;;  %v1536_v44 = vadd.f32 %v1535_v20, %v1534_v39  ;;  %v1547_v48 = vadd.f32 %v1546_v46, %v1545_v52 }
 0x16f   :  { %v1558_v36 = vadd.f32 %v1557_v57, %v1556_v6 }
 0x170   :  { %v1516_v55 = vmax.f32 %v1515_v23, 0.0  ;;  %v1526_v34 = vmax.f32 %v1525_v10, 0.0  ;;  %v1537_v60 = vmax.f32 %v1536_v44, 0.0  ;;  %v1548_v13 = vmax.f32 %v1547_v48, 0.0 }
 0x171   :  { %v1559_v28 = vmax.f32 %v1558_v36, 0.0 }
 0x172   :  { %v1518_v30 = vmul.f32 %v1517_v5, %v1516_v55  ;;  %v1528_v9 = vmul.f32 %v1527_v29, %v1526_v34  ;;  %v1539_v45 = vmul.f32 %v1538_v42, %v1537_v60  ;;  %v1550_v22 = vmul.f32 %v1549_v24, %v1548_v13 }
 0x173   :  { %v1561_v38 = vmul.f32 %v1560_v14, %v1559_v28 }
 0x174   :  { %v1529_v49 = vadd.f32 %v1528_v9, %v1518_v30 }
 0x176   :  { %v1540_v56 = vadd.f32 %v1539_v45, %v1529_v49 }
 0x178   :  { %v1551_v19 = vadd.f32 %v1550_v22, %v1540_v56 }
 0x17a   :  { %v1562_v53 = vadd.f32 %v1561_v38, %v1551_v19 }
 0x17c   :  { %v1564_v47 = vadd.f32 %v1563_v61, %v1562_v53 }
 0x17e   :  { %1565 = vst [vmem:[#allocation9] sm:$0xff] %v1564_v47 }
 0x17f   :  { %1576 = dma.vmem_to_hbm [thread:$0]  %s1572_s20, 128, %s1574_s23, [#allocation4]  }
 0x180   :  { %1701 = dma.done.wait [#allocation4], 128  }
 0x181   :  { %1702 = vsyncadd [#allocation4], 4294967168 }
 0x182   :  { %1581 = vsyncpa [#allocation3], 1 }
 0x183   :  { %1582 = vsyncpa [#allocation8], 1 }
 0x184   :  { %1583 = vsyncpa [#allocation4], 1 }
 0x185   :  { %1584 = vsyncpa [#allocation5], 1 }

</bundles_post_ra>
